<compile_context>
chip_gen: v7x
topology: tpu7x:2x2x1
jax: 0.10.0
libtpu: 0.0.40
codegen_flags: <defaults>
</compile_context>

<pallas_src>
import jax
import jax.numpy as jnp
from jax import lax
from jax.experimental import pallas as pl
from jax.experimental.pallas import tpu as pltpu

LANE = 128                # lanes per vreg (batch elements map onto lanes)
SUB = 8                   # f32 sublanes per vreg
MIN_TILE = SUB * LANE     # 1024 batch elements = one full f32 (8x128) vreg tile


def _round_up(a, m):
    return ((a + m - 1) // m) * m


def _unroll_factor(n, cap=8):
    # Largest divisor of n that is <= cap (keeps fori_loop unrolling exact).
    for u in range(min(n, cap), 0, -1):
        if n % u == 0:
            return u
    return 1


def _make_mlp_kernel(n_sub, unroll):
    def mlp_kernel(w1_ref, b1_ref, w2_ref, b2_ref, w3_ref, b3_ref, x_ref, o_ref):
        # ---- hoist all 141 SMEM scalar reads once per grid step --------------
        # (loop bodies are not CSE'd across iterations; keep slds out of them)
        w1 = [w1_ref[i] for i in range(20)]    # PyTorch W1 [10,2] row-major
        b1 = [b1_ref[i] for i in range(10)]
        w2 = [w2_ref[i] for i in range(100)]   # PyTorch W2 [10,10] row-major
        b2 = [b2_ref[i] for i in range(10)]
        w3 = [w3_ref[i] for i in range(10)]    # PyTorch W3 [1,10]
        b3 = b3_ref[0]

        x0_ref = x_ref.at[0]   # [TR, 128] view, feature 0 (no load yet)
        x1_ref = x_ref.at[1]   # [TR, 128] view, feature 1

        # ---- one-vreg (8x128) sub-tiles: caps live pressure at ~14 vregs -----
        def body(r, carry):
            r0 = pl.multiple_of(r * SUB, SUB)
            x0 = x0_ref[pl.ds(r0, SUB), :]     # [8, 128] — one f32 vreg
            x1 = x1_ref[pl.ds(r0, SUB), :]

            # Layer 1: Linear(2 -> 10) + ReLU, scalar-broadcast FMAs on the VPU.
            # w1[2*j + k] == W1[j, k]
            h1 = [jnp.maximum(w1[2 * j] * x0 + w1[2 * j + 1] * x1 + b1[j], 0.0)
                  for j in range(10)]

            # Layers 2 + 3 fused:
            #   out = sum_j W3[0,j] * ReLU(W2[j,:] . h1 + b2[j]) + b3
            # (never materializes the full h2 list -> ~half the register pressure)
            out = None
            for j in range(10):
                acc = w2[10 * j] * h1[0] + b2[j]
                for k in range(1, 10):
                    acc = acc + w2[10 * j + k] * h1[k]
                h2j = jnp.maximum(acc, 0.0)
                contrib = w3[j] * h2j
                out = contrib if out is None else out + contrib
            out = out + b3

            o_ref[pl.ds(r0, SUB), :] = out.astype(o_ref.dtype)  # lane-dense vst
            return carry

        lax.fori_loop(0, n_sub, body, 0, unroll=unroll)

    return mlp_kernel


def circle_model_v2(x, params, block_batch=65536):
    """Fused forward pass of CircleModelV2.

    x: [B, 2] float32
    params: PyTorch-convention weights:
        w1 [10, 2], b1 [10], w2 [10, 10], b2 [10], w3 [1, 10], b3 [1]
    returns logits [B, 1] float32
    """
    B = x.shape[0]
    x = x.astype(jnp.float32)

    # Batch tile: multiple of 1024 (one f32 vreg of batch elems), capped.
    TB = min(_round_up(block_batch, MIN_TILE), _round_up(B, MIN_TILE))
    # Prefer >= 2 grid steps when possible so v7x's two TensorCores split the batch.
    if _round_up(B, TB) // TB == 1 and TB >= 2 * MIN_TILE:
        TB = _round_up(TB // 2, MIN_TILE)
    B_pad = _round_up(B, TB)
    TR = TB // LANE            # batch rows per grid step
    R = B_pad // LANE          # total batch rows
    n_sub = TR // SUB          # one-vreg sub-tiles per grid step
    grid = (B_pad // TB,)

    # Batch-on-lanes layout [2, R, 128]: one pad (if needed) + one transpose;
    # the reshape is a free bitcast. Padded tail lanes compute garbage derived
    # from ReLU(bias) that is discarded by the final [:B] slice.
    if B_pad != B:
        x = jnp.pad(x, ((0, B_pad - B), (0, 0)))
    xt = x.T.reshape(2, R, LANE)

    # Flatten params to 1-D f32 for compact SMEM residency across grid steps.
    w1 = params["w1"].astype(jnp.float32).reshape(-1)   # [20]
    b1 = params["b1"].astype(jnp.float32).reshape(-1)   # [10]
    w2 = params["w2"].astype(jnp.float32).reshape(-1)   # [100]
    b2 = params["b2"].astype(jnp.float32).reshape(-1)   # [10]
    w3 = params["w3"].astype(jnp.float32).reshape(-1)   # [10]
    b3 = params["b3"].astype(jnp.float32).reshape(-1)   # [1]

    smem_spec = pl.BlockSpec(memory_space=pltpu.MemorySpace.SMEM)

    # ~300 flops and ~12 bytes of HBM traffic per (padded) batch element.
    cost = pl.CostEstimate(flops=300 * B_pad, transcendentals=0,
                           bytes_accessed=12 * B_pad + 4 * 151)

    out = pl.pallas_call(
        _make_mlp_kernel(n_sub, _unroll_factor(n_sub)),
        out_shape=jax.ShapeDtypeStruct((R, LANE), jnp.float32),
        grid=grid,
        in_specs=[smem_spec] * 6 + [
            pl.BlockSpec((2, TR, LANE), lambda i: (0, i, 0)),
        ],
        out_specs=pl.BlockSpec((TR, LANE), lambda i: (i, 0)),
        compiler_params=pltpu.CompilerParams(
            dimension_semantics=("parallel",),
        ),
        cost_estimate=cost,
    )(w1, b1, w2, b2, w3, b3, xt)

    logits = out.reshape(B_pad, 1)
    if B_pad != B:
        logits = logits[:B]
    return logits


def init_params(key):
    """Deterministic init mirroring nn.Linear's U(-1/sqrt(fan_in), 1/sqrt(fan_in))."""
    def linear(key, fan_in, fan_out):
        kw, kb = jax.random.split(key)
        bound = 1.0 / jnp.sqrt(fan_in)
        w = jax.random.uniform(kw, (fan_out, fan_in), jnp.float32, -bound, bound)
        b = jax.random.uniform(kb, (fan_out,), jnp.float32, -bound, bound)
        return w, b

    k1, k2, k3 = jax.random.split(key, 3)
    w1, b1 = linear(k1, 2, 10)
    w2, b2 = linear(k2, 10, 10)
    w3, b3 = linear(k3, 10, 1)
    return {"w1": w1, "b1": b1, "w2": w2, "b2": b2, "w3": w3, "b3": b3}


def reference(x, p):
    h1 = jnp.maximum(x @ p["w1"].T + p["b1"], 0.0)
    h2 = jnp.maximum(h1 @ p["w2"].T + p["b2"], 0.0)
    return h2 @ p["w3"].T + p["b3"]


if __name__ == "__main__":
    key = jax.random.PRNGKey(0)
    kx, kx2, kp = jax.random.split(key, 3)
    params = init_params(kp)

    # Small-shape check (single grid step, single sub-tile).
    B = 8
    x = jax.random.normal(kx, (B, 2), jnp.float32)
    out = jax.block_until_ready(circle_model_v2(x, params))
    ref = reference(x, params)
    assert out.shape == (B, 1), out.shape
    assert jnp.allclose(out, ref, atol=1e-5, rtol=1e-5), (out, ref)

    # Multi-step / multi-sub-tile / padded-tail check (2 grid steps, n_sub=2).
    B2 = 2500
    x2 = jax.random.normal(kx2, (B2, 2), jnp.float32)
    out2 = jax.block_until_ready(circle_model_v2(x2, params, block_batch=2048))
    ref2 = reference(x2, params)
    assert out2.shape == (B2, 1), out2.shape
    assert jnp.allclose(out2, ref2, atol=1e-5, rtol=1e-5)

    print("KERNEL_OK")
</pallas_src>

<mosaic_0001>
module attributes {stable_mosaic.version = 11 : i64} {
  func.func @mlp_kernel(%arg0: i32, %arg1: memref<20xf32, #tpu.memory_space<smem>>, %arg2: memref<10xf32, #tpu.memory_space<smem>>, %arg3: memref<100xf32, #tpu.memory_space<smem>>, %arg4: memref<10xf32, #tpu.memory_space<smem>>, %arg5: memref<10xf32, #tpu.memory_space<smem>>, %arg6: memref<1xf32, #tpu.memory_space<smem>>, %arg7: memref<2x8x128xf32, #tpu.memory_space<vmem>>, %arg8: memref<8x128xf32, #tpu.memory_space<vmem>>) attributes {dimension_semantics = [#tpu.dimension_semantics<parallel>], iteration_bounds = array<i64: 1>, scalar_prefetch = 0 : i64, scratch_operands = 0 : i64, tpu.core_type = #tpu.core_type<tc>, window_params = [{transform_indices = @transform_0, window_bounds = array<i64: 20>}, {transform_indices = @transform_1, window_bounds = array<i64: 10>}, {transform_indices = @transform_2, window_bounds = array<i64: 100>}, {transform_indices = @transform_3, window_bounds = array<i64: 10>}, {transform_indices = @transform_4, window_bounds = array<i64: 10>}, {transform_indices = @transform_5, window_bounds = array<i64: 1>}, {transform_indices = @transform_6, window_bounds = array<i64: 2, 8, 128>}, {transform_indices = @transform_7, window_bounds = array<i64: 8, 128>}]} {
    %c0 = arith.constant 0 : index
    %0 = memref.load %arg1[%c0] : memref<20xf32, #tpu.memory_space<smem>>
    %c1 = arith.constant 1 : index
    %1 = memref.load %arg1[%c1] : memref<20xf32, #tpu.memory_space<smem>>
    %c2 = arith.constant 2 : index
    %2 = memref.load %arg1[%c2] : memref<20xf32, #tpu.memory_space<smem>>
    %c3 = arith.constant 3 : index
    %3 = memref.load %arg1[%c3] : memref<20xf32, #tpu.memory_space<smem>>
    %c4 = arith.constant 4 : index
    %4 = memref.load %arg1[%c4] : memref<20xf32, #tpu.memory_space<smem>>
    %c5 = arith.constant 5 : index
    %5 = memref.load %arg1[%c5] : memref<20xf32, #tpu.memory_space<smem>>
    %c6 = arith.constant 6 : index
    %6 = memref.load %arg1[%c6] : memref<20xf32, #tpu.memory_space<smem>>
    %c7 = arith.constant 7 : index
    %7 = memref.load %arg1[%c7] : memref<20xf32, #tpu.memory_space<smem>>
    %c8 = arith.constant 8 : index
    %8 = memref.load %arg1[%c8] : memref<20xf32, #tpu.memory_space<smem>>
    %c9 = arith.constant 9 : index
    %9 = memref.load %arg1[%c9] : memref<20xf32, #tpu.memory_space<smem>>
    %c10 = arith.constant 10 : index
    %10 = memref.load %arg1[%c10] : memref<20xf32, #tpu.memory_space<smem>>
    %c11 = arith.constant 11 : index
    %11 = memref.load %arg1[%c11] : memref<20xf32, #tpu.memory_space<smem>>
    %c12 = arith.constant 12 : index
    %12 = memref.load %arg1[%c12] : memref<20xf32, #tpu.memory_space<smem>>
    %c13 = arith.constant 13 : index
    %13 = memref.load %arg1[%c13] : memref<20xf32, #tpu.memory_space<smem>>
    %c14 = arith.constant 14 : index
    %14 = memref.load %arg1[%c14] : memref<20xf32, #tpu.memory_space<smem>>
    %c15 = arith.constant 15 : index
    %15 = memref.load %arg1[%c15] : memref<20xf32, #tpu.memory_space<smem>>
    %c16 = arith.constant 16 : index
    %16 = memref.load %arg1[%c16] : memref<20xf32, #tpu.memory_space<smem>>
    %c17 = arith.constant 17 : index
    %17 = memref.load %arg1[%c17] : memref<20xf32, #tpu.memory_space<smem>>
    %c18 = arith.constant 18 : index
    %18 = memref.load %arg1[%c18] : memref<20xf32, #tpu.memory_space<smem>>
    %c19 = arith.constant 19 : index
    %19 = memref.load %arg1[%c19] : memref<20xf32, #tpu.memory_space<smem>>
    %c0_0 = arith.constant 0 : index
    %20 = memref.load %arg2[%c0_0] : memref<10xf32, #tpu.memory_space<smem>>
    %c1_1 = arith.constant 1 : index
    %21 = memref.load %arg2[%c1_1] : memref<10xf32, #tpu.memory_space<smem>>
    %c2_2 = arith.constant 2 : index
    %22 = memref.load %arg2[%c2_2] : memref<10xf32, #tpu.memory_space<smem>>
    %c3_3 = arith.constant 3 : index
    %23 = memref.load %arg2[%c3_3] : memref<10xf32, #tpu.memory_space<smem>>
    %c4_4 = arith.constant 4 : index
    %24 = memref.load %arg2[%c4_4] : memref<10xf32, #tpu.memory_space<smem>>
    %c5_5 = arith.constant 5 : index
    %25 = memref.load %arg2[%c5_5] : memref<10xf32, #tpu.memory_space<smem>>
    %c6_6 = arith.constant 6 : index
    %26 = memref.load %arg2[%c6_6] : memref<10xf32, #tpu.memory_space<smem>>
    %c7_7 = arith.constant 7 : index
    %27 = memref.load %arg2[%c7_7] : memref<10xf32, #tpu.memory_space<smem>>
    %c8_8 = arith.constant 8 : index
    %28 = memref.load %arg2[%c8_8] : memref<10xf32, #tpu.memory_space<smem>>
    %c9_9 = arith.constant 9 : index
    %29 = memref.load %arg2[%c9_9] : memref<10xf32, #tpu.memory_space<smem>>
    %c0_10 = arith.constant 0 : index
    %30 = memref.load %arg3[%c0_10] : memref<100xf32, #tpu.memory_space<smem>>
    %c1_11 = arith.constant 1 : index
    %31 = memref.load %arg3[%c1_11] : memref<100xf32, #tpu.memory_space<smem>>
    %c2_12 = arith.constant 2 : index
    %32 = memref.load %arg3[%c2_12] : memref<100xf32, #tpu.memory_space<smem>>
    %c3_13 = arith.constant 3 : index
    %33 = memref.load %arg3[%c3_13] : memref<100xf32, #tpu.memory_space<smem>>
    %c4_14 = arith.constant 4 : index
    %34 = memref.load %arg3[%c4_14] : memref<100xf32, #tpu.memory_space<smem>>
    %c5_15 = arith.constant 5 : index
    %35 = memref.load %arg3[%c5_15] : memref<100xf32, #tpu.memory_space<smem>>
    %c6_16 = arith.constant 6 : index
    %36 = memref.load %arg3[%c6_16] : memref<100xf32, #tpu.memory_space<smem>>
    %c7_17 = arith.constant 7 : index
    %37 = memref.load %arg3[%c7_17] : memref<100xf32, #tpu.memory_space<smem>>
    %c8_18 = arith.constant 8 : index
    %38 = memref.load %arg3[%c8_18] : memref<100xf32, #tpu.memory_space<smem>>
    %c9_19 = arith.constant 9 : index
    %39 = memref.load %arg3[%c9_19] : memref<100xf32, #tpu.memory_space<smem>>
    %c10_20 = arith.constant 10 : index
    %40 = memref.load %arg3[%c10_20] : memref<100xf32, #tpu.memory_space<smem>>
    %c11_21 = arith.constant 11 : index
    %41 = memref.load %arg3[%c11_21] : memref<100xf32, #tpu.memory_space<smem>>
    %c12_22 = arith.constant 12 : index
    %42 = memref.load %arg3[%c12_22] : memref<100xf32, #tpu.memory_space<smem>>
    %c13_23 = arith.constant 13 : index
    %43 = memref.load %arg3[%c13_23] : memref<100xf32, #tpu.memory_space<smem>>
    %c14_24 = arith.constant 14 : index
    %44 = memref.load %arg3[%c14_24] : memref<100xf32, #tpu.memory_space<smem>>
    %c15_25 = arith.constant 15 : index
    %45 = memref.load %arg3[%c15_25] : memref<100xf32, #tpu.memory_space<smem>>
    %c16_26 = arith.constant 16 : index
    %46 = memref.load %arg3[%c16_26] : memref<100xf32, #tpu.memory_space<smem>>
    %c17_27 = arith.constant 17 : index
    %47 = memref.load %arg3[%c17_27] : memref<100xf32, #tpu.memory_space<smem>>
    %c18_28 = arith.constant 18 : index
    %48 = memref.load %arg3[%c18_28] : memref<100xf32, #tpu.memory_space<smem>>
    %c19_29 = arith.constant 19 : index
    %49 = memref.load %arg3[%c19_29] : memref<100xf32, #tpu.memory_space<smem>>
    %c20 = arith.constant 20 : index
    %50 = memref.load %arg3[%c20] : memref<100xf32, #tpu.memory_space<smem>>
    %c21 = arith.constant 21 : index
    %51 = memref.load %arg3[%c21] : memref<100xf32, #tpu.memory_space<smem>>
    %c22 = arith.constant 22 : index
    %52 = memref.load %arg3[%c22] : memref<100xf32, #tpu.memory_space<smem>>
    %c23 = arith.constant 23 : index
    %53 = memref.load %arg3[%c23] : memref<100xf32, #tpu.memory_space<smem>>
    %c24 = arith.constant 24 : index
    %54 = memref.load %arg3[%c24] : memref<100xf32, #tpu.memory_space<smem>>
    %c25 = arith.constant 25 : index
    %55 = memref.load %arg3[%c25] : memref<100xf32, #tpu.memory_space<smem>>
    %c26 = arith.constant 26 : index
    %56 = memref.load %arg3[%c26] : memref<100xf32, #tpu.memory_space<smem>>
    %c27 = arith.constant 27 : index
    %57 = memref.load %arg3[%c27] : memref<100xf32, #tpu.memory_space<smem>>
    %c28 = arith.constant 28 : index
    %58 = memref.load %arg3[%c28] : memref<100xf32, #tpu.memory_space<smem>>
    %c29 = arith.constant 29 : index
    %59 = memref.load %arg3[%c29] : memref<100xf32, #tpu.memory_space<smem>>
    %c30 = arith.constant 30 : index
    %60 = memref.load %arg3[%c30] : memref<100xf32, #tpu.memory_space<smem>>
    %c31 = arith.constant 31 : index
    %61 = memref.load %arg3[%c31] : memref<100xf32, #tpu.memory_space<smem>>
    %c32 = arith.constant 32 : index
    %62 = memref.load %arg3[%c32] : memref<100xf32, #tpu.memory_space<smem>>
    %c33 = arith.constant 33 : index
    %63 = memref.load %arg3[%c33] : memref<100xf32, #tpu.memory_space<smem>>
    %c34 = arith.constant 34 : index
    %64 = memref.load %arg3[%c34] : memref<100xf32, #tpu.memory_space<smem>>
    %c35 = arith.constant 35 : index
    %65 = memref.load %arg3[%c35] : memref<100xf32, #tpu.memory_space<smem>>
    %c36 = arith.constant 36 : index
    %66 = memref.load %arg3[%c36] : memref<100xf32, #tpu.memory_space<smem>>
    %c37 = arith.constant 37 : index
    %67 = memref.load %arg3[%c37] : memref<100xf32, #tpu.memory_space<smem>>
    %c38 = arith.constant 38 : index
    %68 = memref.load %arg3[%c38] : memref<100xf32, #tpu.memory_space<smem>>
    %c39 = arith.constant 39 : index
    %69 = memref.load %arg3[%c39] : memref<100xf32, #tpu.memory_space<smem>>
    %c40 = arith.constant 40 : index
    %70 = memref.load %arg3[%c40] : memref<100xf32, #tpu.memory_space<smem>>
    %c41 = arith.constant 41 : index
    %71 = memref.load %arg3[%c41] : memref<100xf32, #tpu.memory_space<smem>>
    %c42 = arith.constant 42 : index
    %72 = memref.load %arg3[%c42] : memref<100xf32, #tpu.memory_space<smem>>
    %c43 = arith.constant 43 : index
    %73 = memref.load %arg3[%c43] : memref<100xf32, #tpu.memory_space<smem>>
    %c44 = arith.constant 44 : index
    %74 = memref.load %arg3[%c44] : memref<100xf32, #tpu.memory_space<smem>>
    %c45 = arith.constant 45 : index
    %75 = memref.load %arg3[%c45] : memref<100xf32, #tpu.memory_space<smem>>
    %c46 = arith.constant 46 : index
    %76 = memref.load %arg3[%c46] : memref<100xf32, #tpu.memory_space<smem>>
    %c47 = arith.constant 47 : index
    %77 = memref.load %arg3[%c47] : memref<100xf32, #tpu.memory_space<smem>>
    %c48 = arith.constant 48 : index
    %78 = memref.load %arg3[%c48] : memref<100xf32, #tpu.memory_space<smem>>
    %c49 = arith.constant 49 : index
    %79 = memref.load %arg3[%c49] : memref<100xf32, #tpu.memory_space<smem>>
    %c50 = arith.constant 50 : index
    %80 = memref.load %arg3[%c50] : memref<100xf32, #tpu.memory_space<smem>>
    %c51 = arith.constant 51 : index
    %81 = memref.load %arg3[%c51] : memref<100xf32, #tpu.memory_space<smem>>
    %c52 = arith.constant 52 : index
    %82 = memref.load %arg3[%c52] : memref<100xf32, #tpu.memory_space<smem>>
    %c53 = arith.constant 53 : index
    %83 = memref.load %arg3[%c53] : memref<100xf32, #tpu.memory_space<smem>>
    %c54 = arith.constant 54 : index
    %84 = memref.load %arg3[%c54] : memref<100xf32, #tpu.memory_space<smem>>
    %c55 = arith.constant 55 : index
    %85 = memref.load %arg3[%c55] : memref<100xf32, #tpu.memory_space<smem>>
    %c56 = arith.constant 56 : index
    %86 = memref.load %arg3[%c56] : memref<100xf32, #tpu.memory_space<smem>>
    %c57 = arith.constant 57 : index
    %87 = memref.load %arg3[%c57] : memref<100xf32, #tpu.memory_space<smem>>
    %c58 = arith.constant 58 : index
    %88 = memref.load %arg3[%c58] : memref<100xf32, #tpu.memory_space<smem>>
    %c59 = arith.constant 59 : index
    %89 = memref.load %arg3[%c59] : memref<100xf32, #tpu.memory_space<smem>>
    %c60 = arith.constant 60 : index
    %90 = memref.load %arg3[%c60] : memref<100xf32, #tpu.memory_space<smem>>
    %c61 = arith.constant 61 : index
    %91 = memref.load %arg3[%c61] : memref<100xf32, #tpu.memory_space<smem>>
    %c62 = arith.constant 62 : index
    %92 = memref.load %arg3[%c62] : memref<100xf32, #tpu.memory_space<smem>>
    %c63 = arith.constant 63 : index
    %93 = memref.load %arg3[%c63] : memref<100xf32, #tpu.memory_space<smem>>
    %c64 = arith.constant 64 : index
    %94 = memref.load %arg3[%c64] : memref<100xf32, #tpu.memory_space<smem>>
    %c65 = arith.constant 65 : index
    %95 = memref.load %arg3[%c65] : memref<100xf32, #tpu.memory_space<smem>>
    %c66 = arith.constant 66 : index
    %96 = memref.load %arg3[%c66] : memref<100xf32, #tpu.memory_space<smem>>
    %c67 = arith.constant 67 : index
    %97 = memref.load %arg3[%c67] : memref<100xf32, #tpu.memory_space<smem>>
    %c68 = arith.constant 68 : index
    %98 = memref.load %arg3[%c68] : memref<100xf32, #tpu.memory_space<smem>>
    %c69 = arith.constant 69 : index
    %99 = memref.load %arg3[%c69] : memref<100xf32, #tpu.memory_space<smem>>
    %c70 = arith.constant 70 : index
    %100 = memref.load %arg3[%c70] : memref<100xf32, #tpu.memory_space<smem>>
    %c71 = arith.constant 71 : index
    %101 = memref.load %arg3[%c71] : memref<100xf32, #tpu.memory_space<smem>>
    %c72 = arith.constant 72 : index
    %102 = memref.load %arg3[%c72] : memref<100xf32, #tpu.memory_space<smem>>
    %c73 = arith.constant 73 : index
    %103 = memref.load %arg3[%c73] : memref<100xf32, #tpu.memory_space<smem>>
    %c74 = arith.constant 74 : index
    %104 = memref.load %arg3[%c74] : memref<100xf32, #tpu.memory_space<smem>>
    %c75 = arith.constant 75 : index
    %105 = memref.load %arg3[%c75] : memref<100xf32, #tpu.memory_space<smem>>
    %c76 = arith.constant 76 : index
    %106 = memref.load %arg3[%c76] : memref<100xf32, #tpu.memory_space<smem>>
    %c77 = arith.constant 77 : index
    %107 = memref.load %arg3[%c77] : memref<100xf32, #tpu.memory_space<smem>>
    %c78 = arith.constant 78 : index
    %108 = memref.load %arg3[%c78] : memref<100xf32, #tpu.memory_space<smem>>
    %c79 = arith.constant 79 : index
    %109 = memref.load %arg3[%c79] : memref<100xf32, #tpu.memory_space<smem>>
    %c80 = arith.constant 80 : index
    %110 = memref.load %arg3[%c80] : memref<100xf32, #tpu.memory_space<smem>>
    %c81 = arith.constant 81 : index
    %111 = memref.load %arg3[%c81] : memref<100xf32, #tpu.memory_space<smem>>
    %c82 = arith.constant 82 : index
    %112 = memref.load %arg3[%c82] : memref<100xf32, #tpu.memory_space<smem>>
    %c83 = arith.constant 83 : index
    %113 = memref.load %arg3[%c83] : memref<100xf32, #tpu.memory_space<smem>>
    %c84 = arith.constant 84 : index
    %114 = memref.load %arg3[%c84] : memref<100xf32, #tpu.memory_space<smem>>
    %c85 = arith.constant 85 : index
    %115 = memref.load %arg3[%c85] : memref<100xf32, #tpu.memory_space<smem>>
    %c86 = arith.constant 86 : index
    %116 = memref.load %arg3[%c86] : memref<100xf32, #tpu.memory_space<smem>>
    %c87 = arith.constant 87 : index
    %117 = memref.load %arg3[%c87] : memref<100xf32, #tpu.memory_space<smem>>
    %c88 = arith.constant 88 : index
    %118 = memref.load %arg3[%c88] : memref<100xf32, #tpu.memory_space<smem>>
    %c89 = arith.constant 89 : index
    %119 = memref.load %arg3[%c89] : memref<100xf32, #tpu.memory_space<smem>>
    %c90 = arith.constant 90 : index
    %120 = memref.load %arg3[%c90] : memref<100xf32, #tpu.memory_space<smem>>
    %c91 = arith.constant 91 : index
    %121 = memref.load %arg3[%c91] : memref<100xf32, #tpu.memory_space<smem>>
    %c92 = arith.constant 92 : index
    %122 = memref.load %arg3[%c92] : memref<100xf32, #tpu.memory_space<smem>>
    %c93 = arith.constant 93 : index
    %123 = memref.load %arg3[%c93] : memref<100xf32, #tpu.memory_space<smem>>
    %c94 = arith.constant 94 : index
    %124 = memref.load %arg3[%c94] : memref<100xf32, #tpu.memory_space<smem>>
    %c95 = arith.constant 95 : index
    %125 = memref.load %arg3[%c95] : memref<100xf32, #tpu.memory_space<smem>>
    %c96 = arith.constant 96 : index
    %126 = memref.load %arg3[%c96] : memref<100xf32, #tpu.memory_space<smem>>
    %c97 = arith.constant 97 : index
    %127 = memref.load %arg3[%c97] : memref<100xf32, #tpu.memory_space<smem>>
    %c98 = arith.constant 98 : index
    %128 = memref.load %arg3[%c98] : memref<100xf32, #tpu.memory_space<smem>>
    %c99 = arith.constant 99 : index
    %129 = memref.load %arg3[%c99] : memref<100xf32, #tpu.memory_space<smem>>
    %c0_30 = arith.constant 0 : index
    %130 = memref.load %arg4[%c0_30] : memref<10xf32, #tpu.memory_space<smem>>
    %c1_31 = arith.constant 1 : index
    %131 = memref.load %arg4[%c1_31] : memref<10xf32, #tpu.memory_space<smem>>
    %c2_32 = arith.constant 2 : index
    %132 = memref.load %arg4[%c2_32] : memref<10xf32, #tpu.memory_space<smem>>
    %c3_33 = arith.constant 3 : index
    %133 = memref.load %arg4[%c3_33] : memref<10xf32, #tpu.memory_space<smem>>
    %c4_34 = arith.constant 4 : index
    %134 = memref.load %arg4[%c4_34] : memref<10xf32, #tpu.memory_space<smem>>
    %c5_35 = arith.constant 5 : index
    %135 = memref.load %arg4[%c5_35] : memref<10xf32, #tpu.memory_space<smem>>
    %c6_36 = arith.constant 6 : index
    %136 = memref.load %arg4[%c6_36] : memref<10xf32, #tpu.memory_space<smem>>
    %c7_37 = arith.constant 7 : index
    %137 = memref.load %arg4[%c7_37] : memref<10xf32, #tpu.memory_space<smem>>
    %c8_38 = arith.constant 8 : index
    %138 = memref.load %arg4[%c8_38] : memref<10xf32, #tpu.memory_space<smem>>
    %c9_39 = arith.constant 9 : index
    %139 = memref.load %arg4[%c9_39] : memref<10xf32, #tpu.memory_space<smem>>
    %c0_40 = arith.constant 0 : index
    %140 = memref.load %arg5[%c0_40] : memref<10xf32, #tpu.memory_space<smem>>
    %c1_41 = arith.constant 1 : index
    %141 = memref.load %arg5[%c1_41] : memref<10xf32, #tpu.memory_space<smem>>
    %c2_42 = arith.constant 2 : index
    %142 = memref.load %arg5[%c2_42] : memref<10xf32, #tpu.memory_space<smem>>
    %c3_43 = arith.constant 3 : index
    %143 = memref.load %arg5[%c3_43] : memref<10xf32, #tpu.memory_space<smem>>
    %c4_44 = arith.constant 4 : index
    %144 = memref.load %arg5[%c4_44] : memref<10xf32, #tpu.memory_space<smem>>
    %c5_45 = arith.constant 5 : index
    %145 = memref.load %arg5[%c5_45] : memref<10xf32, #tpu.memory_space<smem>>
    %c6_46 = arith.constant 6 : index
    %146 = memref.load %arg5[%c6_46] : memref<10xf32, #tpu.memory_space<smem>>
    %c7_47 = arith.constant 7 : index
    %147 = memref.load %arg5[%c7_47] : memref<10xf32, #tpu.memory_space<smem>>
    %c8_48 = arith.constant 8 : index
    %148 = memref.load %arg5[%c8_48] : memref<10xf32, #tpu.memory_space<smem>>
    %c9_49 = arith.constant 9 : index
    %149 = memref.load %arg5[%c9_49] : memref<10xf32, #tpu.memory_space<smem>>
    %c0_50 = arith.constant 0 : index
    %150 = memref.load %arg6[%c0_50] : memref<1xf32, #tpu.memory_space<smem>>
    %c0_i32 = arith.constant 0 : i32
    %c1_i32 = arith.constant 1 : i32
    %c0_i32_51 = arith.constant 0 : i32
    %c8_i32 = arith.constant 8 : i32
    %151 = arith.muli %c0_i32_51, %c8_i32 : i32
    %152 = tpu.assume_multiple %151, 8 : i32
    %c0_i32_52 = arith.constant 0 : i32
    %c0_i32_53 = arith.constant 0 : i32
    %153 = tpu.memref_slice %arg7[%c0_i32, %c0_i32_52, %c0_i32_53] : memref<2x8x128xf32, #tpu.memory_space<vmem>> -> memref<1x8x128xf32, #tpu.memory_space<vmem>>
    %154 = tpu.memref_squeeze %153 : memref<1x8x128xf32, #tpu.memory_space<vmem>> -> memref<8x128xf32, #tpu.memory_space<vmem>>
    %155 = arith.index_cast %152 : i32 to index
    %c0_54 = arith.constant 0 : index
    %156 = vector.load %154[%155, %c0_54] : memref<8x128xf32, #tpu.memory_space<vmem>>, vector<8x128xf32>
    %c0_i32_55 = arith.constant 0 : i32
    %c0_i32_56 = arith.constant 0 : i32
    %157 = tpu.memref_slice %arg7[%c1_i32, %c0_i32_55, %c0_i32_56] : memref<2x8x128xf32, #tpu.memory_space<vmem>> -> memref<1x8x128xf32, #tpu.memory_space<vmem>>
    %158 = tpu.memref_squeeze %157 : memref<1x8x128xf32, #tpu.memory_space<vmem>> -> memref<8x128xf32, #tpu.memory_space<vmem>>
    %159 = arith.index_cast %152 : i32 to index
    %c0_57 = arith.constant 0 : index
    %160 = vector.load %158[%159, %c0_57] : memref<8x128xf32, #tpu.memory_space<vmem>>, vector<8x128xf32>
    %161 = vector.broadcast %0 : f32 to vector<8x128xf32>
    %162 = arith.mulf %161, %156 : vector<8x128xf32>
    %163 = vector.broadcast %1 : f32 to vector<8x128xf32>
    %164 = arith.mulf %163, %160 : vector<8x128xf32>
    %165 = arith.addf %162, %164 : vector<8x128xf32>
    %166 = vector.broadcast %20 : f32 to vector<8x128xf32>
    %167 = arith.addf %165, %166 : vector<8x128xf32>
    %cst = arith.constant 0.000000e+00 : f32
    %168 = vector.broadcast %cst : f32 to vector<8x128xf32>
    %169 = arith.maximumf %167, %168 : vector<8x128xf32>
    %170 = vector.broadcast %2 : f32 to vector<8x128xf32>
    %171 = arith.mulf %170, %156 : vector<8x128xf32>
    %172 = vector.broadcast %3 : f32 to vector<8x128xf32>
    %173 = arith.mulf %172, %160 : vector<8x128xf32>
    %174 = arith.addf %171, %173 : vector<8x128xf32>
    %175 = vector.broadcast %21 : f32 to vector<8x128xf32>
    %176 = arith.addf %174, %175 : vector<8x128xf32>
    %cst_58 = arith.constant 0.000000e+00 : f32
    %177 = vector.broadcast %cst_58 : f32 to vector<8x128xf32>
    %178 = arith.maximumf %176, %177 : vector<8x128xf32>
    %179 = vector.broadcast %4 : f32 to vector<8x128xf32>
    %180 = arith.mulf %179, %156 : vector<8x128xf32>
    %181 = vector.broadcast %5 : f32 to vector<8x128xf32>
    %182 = arith.mulf %181, %160 : vector<8x128xf32>
    %183 = arith.addf %180, %182 : vector<8x128xf32>
    %184 = vector.broadcast %22 : f32 to vector<8x128xf32>
    %185 = arith.addf %183, %184 : vector<8x128xf32>
    %cst_59 = arith.constant 0.000000e+00 : f32
    %186 = vector.broadcast %cst_59 : f32 to vector<8x128xf32>
    %187 = arith.maximumf %185, %186 : vector<8x128xf32>
    %188 = vector.broadcast %6 : f32 to vector<8x128xf32>
    %189 = arith.mulf %188, %156 : vector<8x128xf32>
    %190 = vector.broadcast %7 : f32 to vector<8x128xf32>
    %191 = arith.mulf %190, %160 : vector<8x128xf32>
    %192 = arith.addf %189, %191 : vector<8x128xf32>
    %193 = vector.broadcast %23 : f32 to vector<8x128xf32>
    %194 = arith.addf %192, %193 : vector<8x128xf32>
    %cst_60 = arith.constant 0.000000e+00 : f32
    %195 = vector.broadcast %cst_60 : f32 to vector<8x128xf32>
    %196 = arith.maximumf %194, %195 : vector<8x128xf32>
    %197 = vector.broadcast %8 : f32 to vector<8x128xf32>
    %198 = arith.mulf %197, %156 : vector<8x128xf32>
    %199 = vector.broadcast %9 : f32 to vector<8x128xf32>
    %200 = arith.mulf %199, %160 : vector<8x128xf32>
    %201 = arith.addf %198, %200 : vector<8x128xf32>
    %202 = vector.broadcast %24 : f32 to vector<8x128xf32>
    %203 = arith.addf %201, %202 : vector<8x128xf32>
    %cst_61 = arith.constant 0.000000e+00 : f32
    %204 = vector.broadcast %cst_61 : f32 to vector<8x128xf32>
    %205 = arith.maximumf %203, %204 : vector<8x128xf32>
    %206 = vector.broadcast %10 : f32 to vector<8x128xf32>
    %207 = arith.mulf %206, %156 : vector<8x128xf32>
    %208 = vector.broadcast %11 : f32 to vector<8x128xf32>
    %209 = arith.mulf %208, %160 : vector<8x128xf32>
    %210 = arith.addf %207, %209 : vector<8x128xf32>
    %211 = vector.broadcast %25 : f32 to vector<8x128xf32>
    %212 = arith.addf %210, %211 : vector<8x128xf32>
    %cst_62 = arith.constant 0.000000e+00 : f32
    %213 = vector.broadcast %cst_62 : f32 to vector<8x128xf32>
    %214 = arith.maximumf %212, %213 : vector<8x128xf32>
    %215 = vector.broadcast %12 : f32 to vector<8x128xf32>
    %216 = arith.mulf %215, %156 : vector<8x128xf32>
    %217 = vector.broadcast %13 : f32 to vector<8x128xf32>
    %218 = arith.mulf %217, %160 : vector<8x128xf32>
    %219 = arith.addf %216, %218 : vector<8x128xf32>
    %220 = vector.broadcast %26 : f32 to vector<8x128xf32>
    %221 = arith.addf %219, %220 : vector<8x128xf32>
    %cst_63 = arith.constant 0.000000e+00 : f32
    %222 = vector.broadcast %cst_63 : f32 to vector<8x128xf32>
    %223 = arith.maximumf %221, %222 : vector<8x128xf32>
    %224 = vector.broadcast %14 : f32 to vector<8x128xf32>
    %225 = arith.mulf %224, %156 : vector<8x128xf32>
    %226 = vector.broadcast %15 : f32 to vector<8x128xf32>
    %227 = arith.mulf %226, %160 : vector<8x128xf32>
    %228 = arith.addf %225, %227 : vector<8x128xf32>
    %229 = vector.broadcast %27 : f32 to vector<8x128xf32>
    %230 = arith.addf %228, %229 : vector<8x128xf32>
    %cst_64 = arith.constant 0.000000e+00 : f32
    %231 = vector.broadcast %cst_64 : f32 to vector<8x128xf32>
    %232 = arith.maximumf %230, %231 : vector<8x128xf32>
    %233 = vector.broadcast %16 : f32 to vector<8x128xf32>
    %234 = arith.mulf %233, %156 : vector<8x128xf32>
    %235 = vector.broadcast %17 : f32 to vector<8x128xf32>
    %236 = arith.mulf %235, %160 : vector<8x128xf32>
    %237 = arith.addf %234, %236 : vector<8x128xf32>
    %238 = vector.broadcast %28 : f32 to vector<8x128xf32>
    %239 = arith.addf %237, %238 : vector<8x128xf32>
    %cst_65 = arith.constant 0.000000e+00 : f32
    %240 = vector.broadcast %cst_65 : f32 to vector<8x128xf32>
    %241 = arith.maximumf %239, %240 : vector<8x128xf32>
    %242 = vector.broadcast %18 : f32 to vector<8x128xf32>
    %243 = arith.mulf %242, %156 : vector<8x128xf32>
    %244 = vector.broadcast %19 : f32 to vector<8x128xf32>
    %245 = arith.mulf %244, %160 : vector<8x128xf32>
    %246 = arith.addf %243, %245 : vector<8x128xf32>
    %247 = vector.broadcast %29 : f32 to vector<8x128xf32>
    %248 = arith.addf %246, %247 : vector<8x128xf32>
    %cst_66 = arith.constant 0.000000e+00 : f32
    %249 = vector.broadcast %cst_66 : f32 to vector<8x128xf32>
    %250 = arith.maximumf %248, %249 : vector<8x128xf32>
    %251 = vector.broadcast %30 : f32 to vector<8x128xf32>
    %252 = arith.mulf %251, %169 : vector<8x128xf32>
    %253 = vector.broadcast %130 : f32 to vector<8x128xf32>
    %254 = arith.addf %252, %253 : vector<8x128xf32>
    %255 = vector.broadcast %31 : f32 to vector<8x128xf32>
    %256 = arith.mulf %255, %178 : vector<8x128xf32>
    %257 = arith.addf %254, %256 : vector<8x128xf32>
    %258 = vector.broadcast %32 : f32 to vector<8x128xf32>
    %259 = arith.mulf %258, %187 : vector<8x128xf32>
    %260 = arith.addf %257, %259 : vector<8x128xf32>
    %261 = vector.broadcast %33 : f32 to vector<8x128xf32>
    %262 = arith.mulf %261, %196 : vector<8x128xf32>
    %263 = arith.addf %260, %262 : vector<8x128xf32>
    %264 = vector.broadcast %34 : f32 to vector<8x128xf32>
    %265 = arith.mulf %264, %205 : vector<8x128xf32>
    %266 = arith.addf %263, %265 : vector<8x128xf32>
    %267 = vector.broadcast %35 : f32 to vector<8x128xf32>
    %268 = arith.mulf %267, %214 : vector<8x128xf32>
    %269 = arith.addf %266, %268 : vector<8x128xf32>
    %270 = vector.broadcast %36 : f32 to vector<8x128xf32>
    %271 = arith.mulf %270, %223 : vector<8x128xf32>
    %272 = arith.addf %269, %271 : vector<8x128xf32>
    %273 = vector.broadcast %37 : f32 to vector<8x128xf32>
    %274 = arith.mulf %273, %232 : vector<8x128xf32>
    %275 = arith.addf %272, %274 : vector<8x128xf32>
    %276 = vector.broadcast %38 : f32 to vector<8x128xf32>
    %277 = arith.mulf %276, %241 : vector<8x128xf32>
    %278 = arith.addf %275, %277 : vector<8x128xf32>
    %279 = vector.broadcast %39 : f32 to vector<8x128xf32>
    %280 = arith.mulf %279, %250 : vector<8x128xf32>
    %281 = arith.addf %278, %280 : vector<8x128xf32>
    %cst_67 = arith.constant 0.000000e+00 : f32
    %282 = vector.broadcast %cst_67 : f32 to vector<8x128xf32>
    %283 = arith.maximumf %281, %282 : vector<8x128xf32>
    %284 = vector.broadcast %140 : f32 to vector<8x128xf32>
    %285 = arith.mulf %284, %283 : vector<8x128xf32>
    %286 = vector.broadcast %40 : f32 to vector<8x128xf32>
    %287 = arith.mulf %286, %169 : vector<8x128xf32>
    %288 = vector.broadcast %131 : f32 to vector<8x128xf32>
    %289 = arith.addf %287, %288 : vector<8x128xf32>
    %290 = vector.broadcast %41 : f32 to vector<8x128xf32>
    %291 = arith.mulf %290, %178 : vector<8x128xf32>
    %292 = arith.addf %289, %291 : vector<8x128xf32>
    %293 = vector.broadcast %42 : f32 to vector<8x128xf32>
    %294 = arith.mulf %293, %187 : vector<8x128xf32>
    %295 = arith.addf %292, %294 : vector<8x128xf32>
    %296 = vector.broadcast %43 : f32 to vector<8x128xf32>
    %297 = arith.mulf %296, %196 : vector<8x128xf32>
    %298 = arith.addf %295, %297 : vector<8x128xf32>
    %299 = vector.broadcast %44 : f32 to vector<8x128xf32>
    %300 = arith.mulf %299, %205 : vector<8x128xf32>
    %301 = arith.addf %298, %300 : vector<8x128xf32>
    %302 = vector.broadcast %45 : f32 to vector<8x128xf32>
    %303 = arith.mulf %302, %214 : vector<8x128xf32>
    %304 = arith.addf %301, %303 : vector<8x128xf32>
    %305 = vector.broadcast %46 : f32 to vector<8x128xf32>
    %306 = arith.mulf %305, %223 : vector<8x128xf32>
    %307 = arith.addf %304, %306 : vector<8x128xf32>
    %308 = vector.broadcast %47 : f32 to vector<8x128xf32>
    %309 = arith.mulf %308, %232 : vector<8x128xf32>
    %310 = arith.addf %307, %309 : vector<8x128xf32>
    %311 = vector.broadcast %48 : f32 to vector<8x128xf32>
    %312 = arith.mulf %311, %241 : vector<8x128xf32>
    %313 = arith.addf %310, %312 : vector<8x128xf32>
    %314 = vector.broadcast %49 : f32 to vector<8x128xf32>
    %315 = arith.mulf %314, %250 : vector<8x128xf32>
    %316 = arith.addf %313, %315 : vector<8x128xf32>
    %cst_68 = arith.constant 0.000000e+00 : f32
    %317 = vector.broadcast %cst_68 : f32 to vector<8x128xf32>
    %318 = arith.maximumf %316, %317 : vector<8x128xf32>
    %319 = vector.broadcast %141 : f32 to vector<8x128xf32>
    %320 = arith.mulf %319, %318 : vector<8x128xf32>
    %321 = arith.addf %285, %320 : vector<8x128xf32>
    %322 = vector.broadcast %50 : f32 to vector<8x128xf32>
    %323 = arith.mulf %322, %169 : vector<8x128xf32>
    %324 = vector.broadcast %132 : f32 to vector<8x128xf32>
    %325 = arith.addf %323, %324 : vector<8x128xf32>
    %326 = vector.broadcast %51 : f32 to vector<8x128xf32>
    %327 = arith.mulf %326, %178 : vector<8x128xf32>
    %328 = arith.addf %325, %327 : vector<8x128xf32>
    %329 = vector.broadcast %52 : f32 to vector<8x128xf32>
    %330 = arith.mulf %329, %187 : vector<8x128xf32>
    %331 = arith.addf %328, %330 : vector<8x128xf32>
    %332 = vector.broadcast %53 : f32 to vector<8x128xf32>
    %333 = arith.mulf %332, %196 : vector<8x128xf32>
    %334 = arith.addf %331, %333 : vector<8x128xf32>
    %335 = vector.broadcast %54 : f32 to vector<8x128xf32>
    %336 = arith.mulf %335, %205 : vector<8x128xf32>
    %337 = arith.addf %334, %336 : vector<8x128xf32>
    %338 = vector.broadcast %55 : f32 to vector<8x128xf32>
    %339 = arith.mulf %338, %214 : vector<8x128xf32>
    %340 = arith.addf %337, %339 : vector<8x128xf32>
    %341 = vector.broadcast %56 : f32 to vector<8x128xf32>
    %342 = arith.mulf %341, %223 : vector<8x128xf32>
    %343 = arith.addf %340, %342 : vector<8x128xf32>
    %344 = vector.broadcast %57 : f32 to vector<8x128xf32>
    %345 = arith.mulf %344, %232 : vector<8x128xf32>
    %346 = arith.addf %343, %345 : vector<8x128xf32>
    %347 = vector.broadcast %58 : f32 to vector<8x128xf32>
    %348 = arith.mulf %347, %241 : vector<8x128xf32>
    %349 = arith.addf %346, %348 : vector<8x128xf32>
    %350 = vector.broadcast %59 : f32 to vector<8x128xf32>
    %351 = arith.mulf %350, %250 : vector<8x128xf32>
    %352 = arith.addf %349, %351 : vector<8x128xf32>
    %cst_69 = arith.constant 0.000000e+00 : f32
    %353 = vector.broadcast %cst_69 : f32 to vector<8x128xf32>
    %354 = arith.maximumf %352, %353 : vector<8x128xf32>
    %355 = vector.broadcast %142 : f32 to vector<8x128xf32>
    %356 = arith.mulf %355, %354 : vector<8x128xf32>
    %357 = arith.addf %321, %356 : vector<8x128xf32>
    %358 = vector.broadcast %60 : f32 to vector<8x128xf32>
    %359 = arith.mulf %358, %169 : vector<8x128xf32>
    %360 = vector.broadcast %133 : f32 to vector<8x128xf32>
    %361 = arith.addf %359, %360 : vector<8x128xf32>
    %362 = vector.broadcast %61 : f32 to vector<8x128xf32>
    %363 = arith.mulf %362, %178 : vector<8x128xf32>
    %364 = arith.addf %361, %363 : vector<8x128xf32>
    %365 = vector.broadcast %62 : f32 to vector<8x128xf32>
    %366 = arith.mulf %365, %187 : vector<8x128xf32>
    %367 = arith.addf %364, %366 : vector<8x128xf32>
    %368 = vector.broadcast %63 : f32 to vector<8x128xf32>
    %369 = arith.mulf %368, %196 : vector<8x128xf32>
    %370 = arith.addf %367, %369 : vector<8x128xf32>
    %371 = vector.broadcast %64 : f32 to vector<8x128xf32>
    %372 = arith.mulf %371, %205 : vector<8x128xf32>
    %373 = arith.addf %370, %372 : vector<8x128xf32>
    %374 = vector.broadcast %65 : f32 to vector<8x128xf32>
    %375 = arith.mulf %374, %214 : vector<8x128xf32>
    %376 = arith.addf %373, %375 : vector<8x128xf32>
    %377 = vector.broadcast %66 : f32 to vector<8x128xf32>
    %378 = arith.mulf %377, %223 : vector<8x128xf32>
    %379 = arith.addf %376, %378 : vector<8x128xf32>
    %380 = vector.broadcast %67 : f32 to vector<8x128xf32>
    %381 = arith.mulf %380, %232 : vector<8x128xf32>
    %382 = arith.addf %379, %381 : vector<8x128xf32>
    %383 = vector.broadcast %68 : f32 to vector<8x128xf32>
    %384 = arith.mulf %383, %241 : vector<8x128xf32>
    %385 = arith.addf %382, %384 : vector<8x128xf32>
    %386 = vector.broadcast %69 : f32 to vector<8x128xf32>
    %387 = arith.mulf %386, %250 : vector<8x128xf32>
    %388 = arith.addf %385, %387 : vector<8x128xf32>
    %cst_70 = arith.constant 0.000000e+00 : f32
    %389 = vector.broadcast %cst_70 : f32 to vector<8x128xf32>
    %390 = arith.maximumf %388, %389 : vector<8x128xf32>
    %391 = vector.broadcast %143 : f32 to vector<8x128xf32>
    %392 = arith.mulf %391, %390 : vector<8x128xf32>
    %393 = arith.addf %357, %392 : vector<8x128xf32>
    %394 = vector.broadcast %70 : f32 to vector<8x128xf32>
    %395 = arith.mulf %394, %169 : vector<8x128xf32>
    %396 = vector.broadcast %134 : f32 to vector<8x128xf32>
    %397 = arith.addf %395, %396 : vector<8x128xf32>
    %398 = vector.broadcast %71 : f32 to vector<8x128xf32>
    %399 = arith.mulf %398, %178 : vector<8x128xf32>
    %400 = arith.addf %397, %399 : vector<8x128xf32>
    %401 = vector.broadcast %72 : f32 to vector<8x128xf32>
    %402 = arith.mulf %401, %187 : vector<8x128xf32>
    %403 = arith.addf %400, %402 : vector<8x128xf32>
    %404 = vector.broadcast %73 : f32 to vector<8x128xf32>
    %405 = arith.mulf %404, %196 : vector<8x128xf32>
    %406 = arith.addf %403, %405 : vector<8x128xf32>
    %407 = vector.broadcast %74 : f32 to vector<8x128xf32>
    %408 = arith.mulf %407, %205 : vector<8x128xf32>
    %409 = arith.addf %406, %408 : vector<8x128xf32>
    %410 = vector.broadcast %75 : f32 to vector<8x128xf32>
    %411 = arith.mulf %410, %214 : vector<8x128xf32>
    %412 = arith.addf %409, %411 : vector<8x128xf32>
    %413 = vector.broadcast %76 : f32 to vector<8x128xf32>
    %414 = arith.mulf %413, %223 : vector<8x128xf32>
    %415 = arith.addf %412, %414 : vector<8x128xf32>
    %416 = vector.broadcast %77 : f32 to vector<8x128xf32>
    %417 = arith.mulf %416, %232 : vector<8x128xf32>
    %418 = arith.addf %415, %417 : vector<8x128xf32>
    %419 = vector.broadcast %78 : f32 to vector<8x128xf32>
    %420 = arith.mulf %419, %241 : vector<8x128xf32>
    %421 = arith.addf %418, %420 : vector<8x128xf32>
    %422 = vector.broadcast %79 : f32 to vector<8x128xf32>
    %423 = arith.mulf %422, %250 : vector<8x128xf32>
    %424 = arith.addf %421, %423 : vector<8x128xf32>
    %cst_71 = arith.constant 0.000000e+00 : f32
    %425 = vector.broadcast %cst_71 : f32 to vector<8x128xf32>
    %426 = arith.maximumf %424, %425 : vector<8x128xf32>
    %427 = vector.broadcast %144 : f32 to vector<8x128xf32>
    %428 = arith.mulf %427, %426 : vector<8x128xf32>
    %429 = arith.addf %393, %428 : vector<8x128xf32>
    %430 = vector.broadcast %80 : f32 to vector<8x128xf32>
    %431 = arith.mulf %430, %169 : vector<8x128xf32>
    %432 = vector.broadcast %135 : f32 to vector<8x128xf32>
    %433 = arith.addf %431, %432 : vector<8x128xf32>
    %434 = vector.broadcast %81 : f32 to vector<8x128xf32>
    %435 = arith.mulf %434, %178 : vector<8x128xf32>
    %436 = arith.addf %433, %435 : vector<8x128xf32>
    %437 = vector.broadcast %82 : f32 to vector<8x128xf32>
    %438 = arith.mulf %437, %187 : vector<8x128xf32>
    %439 = arith.addf %436, %438 : vector<8x128xf32>
    %440 = vector.broadcast %83 : f32 to vector<8x128xf32>
    %441 = arith.mulf %440, %196 : vector<8x128xf32>
    %442 = arith.addf %439, %441 : vector<8x128xf32>
    %443 = vector.broadcast %84 : f32 to vector<8x128xf32>
    %444 = arith.mulf %443, %205 : vector<8x128xf32>
    %445 = arith.addf %442, %444 : vector<8x128xf32>
    %446 = vector.broadcast %85 : f32 to vector<8x128xf32>
    %447 = arith.mulf %446, %214 : vector<8x128xf32>
    %448 = arith.addf %445, %447 : vector<8x128xf32>
    %449 = vector.broadcast %86 : f32 to vector<8x128xf32>
    %450 = arith.mulf %449, %223 : vector<8x128xf32>
    %451 = arith.addf %448, %450 : vector<8x128xf32>
    %452 = vector.broadcast %87 : f32 to vector<8x128xf32>
    %453 = arith.mulf %452, %232 : vector<8x128xf32>
    %454 = arith.addf %451, %453 : vector<8x128xf32>
    %455 = vector.broadcast %88 : f32 to vector<8x128xf32>
    %456 = arith.mulf %455, %241 : vector<8x128xf32>
    %457 = arith.addf %454, %456 : vector<8x128xf32>
    %458 = vector.broadcast %89 : f32 to vector<8x128xf32>
    %459 = arith.mulf %458, %250 : vector<8x128xf32>
    %460 = arith.addf %457, %459 : vector<8x128xf32>
    %cst_72 = arith.constant 0.000000e+00 : f32
    %461 = vector.broadcast %cst_72 : f32 to vector<8x128xf32>
    %462 = arith.maximumf %460, %461 : vector<8x128xf32>
    %463 = vector.broadcast %145 : f32 to vector<8x128xf32>
    %464 = arith.mulf %463, %462 : vector<8x128xf32>
    %465 = arith.addf %429, %464 : vector<8x128xf32>
    %466 = vector.broadcast %90 : f32 to vector<8x128xf32>
    %467 = arith.mulf %466, %169 : vector<8x128xf32>
    %468 = vector.broadcast %136 : f32 to vector<8x128xf32>
    %469 = arith.addf %467, %468 : vector<8x128xf32>
    %470 = vector.broadcast %91 : f32 to vector<8x128xf32>
    %471 = arith.mulf %470, %178 : vector<8x128xf32>
    %472 = arith.addf %469, %471 : vector<8x128xf32>
    %473 = vector.broadcast %92 : f32 to vector<8x128xf32>
    %474 = arith.mulf %473, %187 : vector<8x128xf32>
    %475 = arith.addf %472, %474 : vector<8x128xf32>
    %476 = vector.broadcast %93 : f32 to vector<8x128xf32>
    %477 = arith.mulf %476, %196 : vector<8x128xf32>
    %478 = arith.addf %475, %477 : vector<8x128xf32>
    %479 = vector.broadcast %94 : f32 to vector<8x128xf32>
    %480 = arith.mulf %479, %205 : vector<8x128xf32>
    %481 = arith.addf %478, %480 : vector<8x128xf32>
    %482 = vector.broadcast %95 : f32 to vector<8x128xf32>
    %483 = arith.mulf %482, %214 : vector<8x128xf32>
    %484 = arith.addf %481, %483 : vector<8x128xf32>
    %485 = vector.broadcast %96 : f32 to vector<8x128xf32>
    %486 = arith.mulf %485, %223 : vector<8x128xf32>
    %487 = arith.addf %484, %486 : vector<8x128xf32>
    %488 = vector.broadcast %97 : f32 to vector<8x128xf32>
    %489 = arith.mulf %488, %232 : vector<8x128xf32>
    %490 = arith.addf %487, %489 : vector<8x128xf32>
    %491 = vector.broadcast %98 : f32 to vector<8x128xf32>
    %492 = arith.mulf %491, %241 : vector<8x128xf32>
    %493 = arith.addf %490, %492 : vector<8x128xf32>
    %494 = vector.broadcast %99 : f32 to vector<8x128xf32>
    %495 = arith.mulf %494, %250 : vector<8x128xf32>
    %496 = arith.addf %493, %495 : vector<8x128xf32>
    %cst_73 = arith.constant 0.000000e+00 : f32
    %497 = vector.broadcast %cst_73 : f32 to vector<8x128xf32>
    %498 = arith.maximumf %496, %497 : vector<8x128xf32>
    %499 = vector.broadcast %146 : f32 to vector<8x128xf32>
    %500 = arith.mulf %499, %498 : vector<8x128xf32>
    %501 = arith.addf %465, %500 : vector<8x128xf32>
    %502 = vector.broadcast %100 : f32 to vector<8x128xf32>
    %503 = arith.mulf %502, %169 : vector<8x128xf32>
    %504 = vector.broadcast %137 : f32 to vector<8x128xf32>
    %505 = arith.addf %503, %504 : vector<8x128xf32>
    %506 = vector.broadcast %101 : f32 to vector<8x128xf32>
    %507 = arith.mulf %506, %178 : vector<8x128xf32>
    %508 = arith.addf %505, %507 : vector<8x128xf32>
    %509 = vector.broadcast %102 : f32 to vector<8x128xf32>
    %510 = arith.mulf %509, %187 : vector<8x128xf32>
    %511 = arith.addf %508, %510 : vector<8x128xf32>
    %512 = vector.broadcast %103 : f32 to vector<8x128xf32>
    %513 = arith.mulf %512, %196 : vector<8x128xf32>
    %514 = arith.addf %511, %513 : vector<8x128xf32>
    %515 = vector.broadcast %104 : f32 to vector<8x128xf32>
    %516 = arith.mulf %515, %205 : vector<8x128xf32>
    %517 = arith.addf %514, %516 : vector<8x128xf32>
    %518 = vector.broadcast %105 : f32 to vector<8x128xf32>
    %519 = arith.mulf %518, %214 : vector<8x128xf32>
    %520 = arith.addf %517, %519 : vector<8x128xf32>
    %521 = vector.broadcast %106 : f32 to vector<8x128xf32>
    %522 = arith.mulf %521, %223 : vector<8x128xf32>
    %523 = arith.addf %520, %522 : vector<8x128xf32>
    %524 = vector.broadcast %107 : f32 to vector<8x128xf32>
    %525 = arith.mulf %524, %232 : vector<8x128xf32>
    %526 = arith.addf %523, %525 : vector<8x128xf32>
    %527 = vector.broadcast %108 : f32 to vector<8x128xf32>
    %528 = arith.mulf %527, %241 : vector<8x128xf32>
    %529 = arith.addf %526, %528 : vector<8x128xf32>
    %530 = vector.broadcast %109 : f32 to vector<8x128xf32>
    %531 = arith.mulf %530, %250 : vector<8x128xf32>
    %532 = arith.addf %529, %531 : vector<8x128xf32>
    %cst_74 = arith.constant 0.000000e+00 : f32
    %533 = vector.broadcast %cst_74 : f32 to vector<8x128xf32>
    %534 = arith.maximumf %532, %533 : vector<8x128xf32>
    %535 = vector.broadcast %147 : f32 to vector<8x128xf32>
    %536 = arith.mulf %535, %534 : vector<8x128xf32>
    %537 = arith.addf %501, %536 : vector<8x128xf32>
    %538 = vector.broadcast %110 : f32 to vector<8x128xf32>
    %539 = arith.mulf %538, %169 : vector<8x128xf32>
    %540 = vector.broadcast %138 : f32 to vector<8x128xf32>
    %541 = arith.addf %539, %540 : vector<8x128xf32>
    %542 = vector.broadcast %111 : f32 to vector<8x128xf32>
    %543 = arith.mulf %542, %178 : vector<8x128xf32>
    %544 = arith.addf %541, %543 : vector<8x128xf32>
    %545 = vector.broadcast %112 : f32 to vector<8x128xf32>
    %546 = arith.mulf %545, %187 : vector<8x128xf32>
    %547 = arith.addf %544, %546 : vector<8x128xf32>
    %548 = vector.broadcast %113 : f32 to vector<8x128xf32>
    %549 = arith.mulf %548, %196 : vector<8x128xf32>
    %550 = arith.addf %547, %549 : vector<8x128xf32>
    %551 = vector.broadcast %114 : f32 to vector<8x128xf32>
    %552 = arith.mulf %551, %205 : vector<8x128xf32>
    %553 = arith.addf %550, %552 : vector<8x128xf32>
    %554 = vector.broadcast %115 : f32 to vector<8x128xf32>
    %555 = arith.mulf %554, %214 : vector<8x128xf32>
    %556 = arith.addf %553, %555 : vector<8x128xf32>
    %557 = vector.broadcast %116 : f32 to vector<8x128xf32>
    %558 = arith.mulf %557, %223 : vector<8x128xf32>
    %559 = arith.addf %556, %558 : vector<8x128xf32>
    %560 = vector.broadcast %117 : f32 to vector<8x128xf32>
    %561 = arith.mulf %560, %232 : vector<8x128xf32>
    %562 = arith.addf %559, %561 : vector<8x128xf32>
    %563 = vector.broadcast %118 : f32 to vector<8x128xf32>
    %564 = arith.mulf %563, %241 : vector<8x128xf32>
    %565 = arith.addf %562, %564 : vector<8x128xf32>
    %566 = vector.broadcast %119 : f32 to vector<8x128xf32>
    %567 = arith.mulf %566, %250 : vector<8x128xf32>
    %568 = arith.addf %565, %567 : vector<8x128xf32>
    %cst_75 = arith.constant 0.000000e+00 : f32
    %569 = vector.broadcast %cst_75 : f32 to vector<8x128xf32>
    %570 = arith.maximumf %568, %569 : vector<8x128xf32>
    %571 = vector.broadcast %148 : f32 to vector<8x128xf32>
    %572 = arith.mulf %571, %570 : vector<8x128xf32>
    %573 = arith.addf %537, %572 : vector<8x128xf32>
    %574 = vector.broadcast %120 : f32 to vector<8x128xf32>
    %575 = arith.mulf %574, %169 : vector<8x128xf32>
    %576 = vector.broadcast %139 : f32 to vector<8x128xf32>
    %577 = arith.addf %575, %576 : vector<8x128xf32>
    %578 = vector.broadcast %121 : f32 to vector<8x128xf32>
    %579 = arith.mulf %578, %178 : vector<8x128xf32>
    %580 = arith.addf %577, %579 : vector<8x128xf32>
    %581 = vector.broadcast %122 : f32 to vector<8x128xf32>
    %582 = arith.mulf %581, %187 : vector<8x128xf32>
    %583 = arith.addf %580, %582 : vector<8x128xf32>
    %584 = vector.broadcast %123 : f32 to vector<8x128xf32>
    %585 = arith.mulf %584, %196 : vector<8x128xf32>
    %586 = arith.addf %583, %585 : vector<8x128xf32>
    %587 = vector.broadcast %124 : f32 to vector<8x128xf32>
    %588 = arith.mulf %587, %205 : vector<8x128xf32>
    %589 = arith.addf %586, %588 : vector<8x128xf32>
    %590 = vector.broadcast %125 : f32 to vector<8x128xf32>
    %591 = arith.mulf %590, %214 : vector<8x128xf32>
    %592 = arith.addf %589, %591 : vector<8x128xf32>
    %593 = vector.broadcast %126 : f32 to vector<8x128xf32>
    %594 = arith.mulf %593, %223 : vector<8x128xf32>
    %595 = arith.addf %592, %594 : vector<8x128xf32>
    %596 = vector.broadcast %127 : f32 to vector<8x128xf32>
    %597 = arith.mulf %596, %232 : vector<8x128xf32>
    %598 = arith.addf %595, %597 : vector<8x128xf32>
    %599 = vector.broadcast %128 : f32 to vector<8x128xf32>
    %600 = arith.mulf %599, %241 : vector<8x128xf32>
    %601 = arith.addf %598, %600 : vector<8x128xf32>
    %602 = vector.broadcast %129 : f32 to vector<8x128xf32>
    %603 = arith.mulf %602, %250 : vector<8x128xf32>
    %604 = arith.addf %601, %603 : vector<8x128xf32>
    %cst_76 = arith.constant 0.000000e+00 : f32
    %605 = vector.broadcast %cst_76 : f32 to vector<8x128xf32>
    %606 = arith.maximumf %604, %605 : vector<8x128xf32>
    %607 = vector.broadcast %149 : f32 to vector<8x128xf32>
    %608 = arith.mulf %607, %606 : vector<8x128xf32>
    %609 = arith.addf %573, %608 : vector<8x128xf32>
    %610 = vector.broadcast %150 : f32 to vector<8x128xf32>
    %611 = arith.addf %609, %610 : vector<8x128xf32>
    %612 = arith.index_cast %152 : i32 to index
    %c0_77 = arith.constant 0 : index
    %613 = vector.load %arg8[%612, %c0_77] : memref<8x128xf32, #tpu.memory_space<vmem>>, vector<8x128xf32>
    tpu.vector_store %arg8[%612, %c0_77], %611 {strides = array<i32>} : memref<8x128xf32, #tpu.memory_space<vmem>>, vector<8x128xf32>,
    %c1_i32_78 = arith.constant 1 : i32
    return
  }
  func.func @transform_0(%arg0: i32) -> i32 {
    %c0_i32 = arith.constant 0 : i32
    %c0_i32_0 = arith.constant 0 : i32
    return %c0_i32 : i32
  }
  func.func @transform_1(%arg0: i32) -> i32 {
    %c0_i32 = arith.constant 0 : i32
    %c0_i32_0 = arith.constant 0 : i32
    return %c0_i32 : i32
  }
  func.func @transform_2(%arg0: i32) -> i32 {
    %c0_i32 = arith.constant 0 : i32
    %c0_i32_0 = arith.constant 0 : i32
    return %c0_i32 : i32
  }
  func.func @transform_3(%arg0: i32) -> i32 {
    %c0_i32 = arith.constant 0 : i32
    %c0_i32_0 = arith.constant 0 : i32
    return %c0_i32 : i32
  }
  func.func @transform_4(%arg0: i32) -> i32 {
    %c0_i32 = arith.constant 0 : i32
    %c0_i32_0 = arith.constant 0 : i32
    return %c0_i32 : i32
  }
  func.func @transform_5(%arg0: i32) -> i32 {
    %c0_i32 = arith.constant 0 : i32
    %c0_i32_0 = arith.constant 0 : i32
    return %c0_i32 : i32
  }
  func.func @transform_6(%arg0: i32) -> (i32, i32, i32) {
    %c0_i32 = arith.constant 0 : i32
    %c0_i32_0 = arith.constant 0 : i32
    %c0_i32_1 = arith.constant 0 : i32
    return %c0_i32, %arg0, %c0_i32_0 : i32, i32, i32
  }
  func.func @transform_7(%arg0: i32) -> (i32, i32) {
    %c0_i32 = arith.constant 0 : i32
    %c0_i32_0 = arith.constant 0 : i32
    return %arg0, %c0_i32 : i32, i32
  }
}

</mosaic_0001>

<bundles_post_ra>
// kernel: tpu_custom_call.1
= control target key start
LH: loop header
LB: loop body
LE: loop exit
PB: predicated region body
PF: predicated region fallthrough
CT: control target
= control target key end

     0   :  { %13 = vsyncpa [#allocation5], 0  ;;  %s1856_s0 = inlined_call_operand.vmem [shape: f32[20], index: 0, kind: input, shape index: {}]   ;;  %s1857_s1 = inlined_call_operand.vmem [shape: f32[10], index: 1, kind: input, shape index: {}]   ;;  %s1858_s2 = inlined_call_operand.vmem [shape: f32[100], index: 2, kind: input, shape index: {}]   ;;  %s1859_s3 = inlined_call_operand.vmem [shape: f32[10], index: 3, kind: input, shape index: {}]   ;;  %s1860_s4 = inlined_call_operand.vmem [shape: f32[10], index: 4, kind: input, shape index: {}]   ;;  %s1861_s5 = inlined_call_operand.<no memory space> [shape: f32[1], index: 5, kind: input, shape index: {}]   ;;  %s1862_s6 = inlined_call_operand.vmem [shape: f32[2,8,128], index: 6, kind: input, shape index: {}]   ;;  %s1863_s7 = inlined_call_operand.hbm [shape: f32[8,128], index: 7, kind: output, shape index: {}]  }
   0x1   :  { %14 = vsyncpa [#allocation7], 0 }
   0x2   :  { %15 = vsyncpa [#allocation10], 0  ;;  %s33_s26 = sshll.u32 %s1857_s1, 4  ;;  %s34_s26 = int_to_ptr.vmem [resolvable:$true] %s33_s26 }
   0x3   :  { %16 = vsyncpa [#allocation4], 0  ;;  %s53_s29 = sshll.u32 %s1859_s3, 4  ;;  %s842_s30 = scalar_lea.vmem %s34_s26, 16  ;;  %s54_s29 = int_to_ptr.vmem [resolvable:$true] %s53_s29 }
   0x4   :  { %p843_p0 = scmp.ne.s32.totalorder %s34_s26, %s842_s30  ;;  %p847_p1 = scmp.lt.s32.totalorder %s34_s26, %s34_s26 }
   0x5   :  { %p848_p2 = scmp.lt.s32.totalorder %s842_s30, %s842_s30 }
   0x7   :  { %p849_p3 = por %p848_p2, %p847_p1 }
   0x9   :  { %p850_p4 = pnand %p849_p3, %p843_p0 }
   0xb   :  { %853 = shalt.err (!%p850_p4)
}
   0xc   :  { %s932_s8 = smov [#allocation6]   ;;  %s854_s9 = scalar_lea.vmem %s54_s29, 16 }
   0xd   :  { %36 = dma.vmem_to_smem %s34_s26, 16, %s932_s8, [#allocation7]  }
   0xe   :  { %p855_p5 = scmp.ne.s32.totalorder %s54_s29, %s854_s9  ;;  %p859_p6 = scmp.lt.s32.totalorder %s54_s29, %s54_s29 }
   0xf   :  { %p860_p7 = scmp.lt.s32.totalorder %s854_s9, %s854_s9 }
  0x11   :  { %p861_p8 = por %p860_p7, %p859_p6 }
  0x13   :  { %p862_p9 = pnand %p861_p8, %p855_p5 }
  0x15   :  { %865 = shalt.err (!%p862_p9)
}
  0x16   :  { %s933_s1 = smov [#allocation9]   ;;  %s23_s11 = sshll.u32 %s1856_s0, 4  ;;  %s24_s11 = int_to_ptr.vmem [resolvable:$true] %s23_s11 }
  0x17   :  { %56 = dma.vmem_to_smem %s54_s29, 16, %s933_s1, [#allocation10]  }
  0x18   :  { %s43_s14 = sshll.u32 %s1858_s2, 4  ;;  %s866_s15 = scalar_lea.vmem %s24_s11, 16  ;;  %s44_s14 = int_to_ptr.vmem [resolvable:$true] %s43_s14 }
  0x19   :  { %p867_p10 = scmp.ne.s32.totalorder %s24_s11, %s866_s15  ;;  %p871_p11 = scmp.lt.s32.totalorder %s24_s11, %s24_s11 }
  0x1a   :  { %p872_p12 = scmp.lt.s32.totalorder %s866_s15, %s866_s15 }
  0x1c   :  { %p873_p13 = por %p872_p12, %p871_p11 }
  0x1e   :  { %p874_p0 = pnand %p873_p13, %p867_p10 }
  0x20   :  { %877 = shalt.err (!%p874_p0)
}
  0x21   :  { %s934_s16 = smov [#allocation3]   ;;  %s878_s17 = scalar_lea.vmem %s44_s14, 16 }
  0x22   :  { %26 = dma.vmem_to_smem %s24_s11, 16, %s934_s16, [#allocation5]  }
  0x23   :  { %p879_p1 = scmp.ne.s32.totalorder %s44_s14, %s878_s17  ;;  %p883_p2 = scmp.lt.s32.totalorder %s44_s14, %s44_s14 }
  0x24   :  { %p884_p3 = scmp.lt.s32.totalorder %s878_s17, %s878_s17 }
  0x26   :  { %p885_p4 = por %p884_p3, %p883_p2 }
  0x28   :  { %p886_p5 = pnand %p885_p4, %p879_p1 }
  0x2a   :  { %889 = shalt.err (!%p886_p5)
}
  0x2b   :  { %s935_s0 = smov [#allocation8]   ;;  %s63_s19 = sshll.u32 %s1860_s4, 4  ;;  %s64_s19 = int_to_ptr.vmem [resolvable:$true] %s63_s19 }
  0x2c   :  { %46 = dma.vmem_to_smem %s44_s14, 16, %s935_s0, [#allocation7]  }
  0x2d   :  { %s890_s20 = scalar_lea.vmem %s64_s19, 16  ;;  %p895_p7 = scmp.lt.s32.totalorder %s64_s19, %s64_s19 }
  0x2e   :  { %p891_p6 = scmp.ne.s32.totalorder %s64_s19, %s890_s20  ;;  %p896_p8 = scmp.lt.s32.totalorder %s890_s20, %s890_s20 }
  0x30   :  { %p897_p9 = por %p896_p8, %p895_p7 }
  0x32   :  { %p898_p10 = pnand %p897_p9, %p891_p6 }
  0x34   :  { %901 = shalt.err (!%p898_p10)
}
  0x35   :  { %s936_s21 = smov [#allocation11]  }
  0x36   :  { %66 = dma.vmem_to_smem %s64_s19, 16, %s936_s21, [#allocation10]  }
  0x37   :  { %924 = dma.done.wait [#allocation5], 16  }
  0x38   :  { %925 = vsyncadd [#allocation5], 4294967280 }
  0x39   :  { %926 = dma.done.wait [#allocation7], 32  }
  0x3a   :  { %927 = vsyncadd [#allocation7], 4294967264 }
  0x3b   :  { %928 = dma.done.wait [#allocation10], 32  }
  0x3c   :  { %929 = vsyncadd [#allocation10], 4294967264 }
  0x3d   :  { %86 = sfence }
  0x3e   :  { %s87_s22 = sld [smem:[#allocation3]]  ;;  %s690_s23 = sld [smem:[#allocation3 + $0x1]]  ;;  %v1018_v0 = vld [vmem:[%s1862_s6] sm:$0xff]  ;;  %v1027_v2 = vld [vmem:[%s1862_s6 + $0x8] sm:$0xff] }
  0x3f   :  { %s691_s4 = sld [smem:[#allocation3 + $0x2]]  ;;  %s993_s24 = sld [smem:[#allocation3 + $0x3]] }
  0x40   :  { %s995_s25 = sld [smem:[#allocation3 + $0x4]]  ;;  %s997_s26 = sld [smem:[#allocation3 + $0x5]] }
  0x41   :  { %s999_s27 = sld [smem:[#allocation3 + $0x6]]  ;;  %s1001_s28 = sld [smem:[#allocation3 + $0x7]] }
  0x42   :  { %s1003_s29 = sld [smem:[#allocation3 + $0x8]]  ;;  %s1005_s30 = sld [smem:[#allocation3 + $0x9]] }
  0x43   :  { %s1007_s8 = sld [smem:[#allocation3 + $0xa]]  ;;  %s1009_s9 = sld [smem:[#allocation3 + $0xb]] }
  0x44   :  { %s1011_s1 = sld [smem:[#allocation3 + $0xc]]  ;;  %s1013_s3 = sld [smem:[#allocation3 + $0xd]]  ;;  %v241_v1 = vstv %s87_s22  ;;  %v243_v3 = vstv %s690_s23 }
  0x45   :  { %s1020_s12 = sld [smem:[#allocation3 + $0xe]]  ;;  %s1022_s13 = sld [smem:[#allocation3 + $0xf]]  ;;  %v249_v4 = vstv %s691_s4  ;;  %v251_v5 = vstv %s993_s24  ;;  %v242_v8 = vmul.f32 %v241_v1, %v1018_v0  ;;  %v244_v10 = vmul.f32 %v1027_v2, %v243_v3 }
  0x46   :  { %v257_v6 = vstv %s995_s25  ;;  %v259_v7 = vstv %s997_s26  ;;  %s1032_s16 = sld [smem:[#allocation3 + $0x10]]  ;;  %s1034_s17 = sld [smem:[#allocation3 + $0x11]]  ;;  %v250_v11 = vmul.f32 %v249_v4, %v1018_v0  ;;  %v252_v14 = vmul.f32 %v1027_v2, %v251_v5 }
  0x47   :  { %v265_v9 = vstv %s999_s27  ;;  %s1038_s0 = sld [smem:[#allocation6]]  ;;  %s1040_s2 = sld [smem:[#allocation6 + $0x1]]  ;;  %v267_v12 = vstv %s1001_s28  ;;  %v258_v15 = vmul.f32 %v257_v6, %v1018_v0  ;;  %v260_v16 = vmul.f32 %v1027_v2, %v259_v7 }
  0x48   :  { %v273_v13 = vstv %s1003_s29  ;;  %s1046_s6 = sld [smem:[#allocation6 + $0x2]]  ;;  %s1048_s18 = sld [smem:[#allocation6 + $0x3]]  ;;  %v275_v17 = vstv %s1005_s30  ;;  %v266_v18 = vmul.f32 %v265_v9, %v1018_v0  ;;  %v268_v19 = vmul.f32 %v1027_v2, %v267_v12 }
  0x49   :  { %s1054_s19 = sld [smem:[#allocation6 + $0x4]]  ;;  %s1056_s20 = sld [smem:[#allocation6 + $0x5]]  ;;  %v281_v20 = vstv %s1007_s8  ;;  %v283_v21 = vstv %s1009_s9  ;;  %v274_v22 = vmul.f32 %v273_v13, %v1018_v0  ;;  %v276_v23 = vmul.f32 %v1027_v2, %v275_v17 }
  0x4a   :  { %s1062_s21 = sld [smem:[#allocation6 + $0x6]]  ;;  %s1064_s22 = sld [smem:[#allocation6 + $0x7]]  ;;  %v282_v24 = vmul.f32 %v281_v20, %v1018_v0  ;;  %v289_v25 = vstv %s1011_s1  ;;  %v284_v26 = vmul.f32 %v1027_v2, %v283_v21  ;;  %v291_v27 = vstv %s1013_s3 }
  0x4b   :  { %s1070_s23 = sld [smem:[#allocation3 + $0x12]]  ;;  %v297_v28 = vstv %s1020_s12  ;;  %v299_v29 = vstv %s1022_s13  ;;  %s1076_s4 = sld [smem:[#allocation3 + $0x13]]  ;;  %v245_v30 = vadd.f32 %v244_v10, %v242_v8  ;;  %v253_v31 = vadd.f32 %v252_v14, %v250_v11 }
  0x4c   :  { %s1078_s24 = sld [smem:[#allocation6 + $0x8]]  ;;  %v261_v32 = vadd.f32 %v260_v16, %v258_v15  ;;  %v269_v33 = vadd.f32 %v268_v19, %v266_v18  ;;  %v290_v34 = vmul.f32 %v289_v25, %v1018_v0  ;;  %v292_v35 = vmul.f32 %v1027_v2, %v291_v27  ;;  %s1082_s25 = sld [smem:[#allocation6 + $0x9]] }
  0x4d   :  { %v246_v36 = vstv %s1038_s0  ;;  %v254_v37 = vstv %s1040_s2  ;;  %v298_v38 = vmul.f32 %v297_v28, %v1018_v0  ;;  %v300_v39 = vmul.f32 %v1027_v2, %v299_v29  ;;  %s1090_s26 = sld [smem:[#allocation8]]  ;;  %s1096_s27 = sld [smem:[#allocation8 + $0x1]] }
  0x4e   :  { %v262_v40 = vstv %s1046_s6  ;;  %v270_v41 = vstv %s1048_s18  ;;  %v277_v42 = vadd.f32 %v276_v23, %v274_v22  ;;  %v285_v43 = vadd.f32 %v284_v26, %v282_v24  ;;  %s1098_s28 = sld [smem:[#allocation8 + $0x2]]  ;;  %s1101_s29 = sld [smem:[#allocation8 + $0x3]] }
  0x4f   :  { %v278_v44 = vstv %s1054_s19  ;;  %v286_v45 = vstv %s1056_s20  ;;  %v305_v46 = vstv %s1032_s16  ;;  %v307_v47 = vstv %s1034_s17  ;;  %s1103_s30 = sld [smem:[#allocation8 + $0x4]]  ;;  %s1106_s8 = sld [smem:[#allocation8 + $0x5]] }
  0x50   :  { %v247_v48 = vadd.f32 %v246_v36, %v245_v30  ;;  %v255_v49 = vadd.f32 %v254_v37, %v253_v31  ;;  %v293_v50 = vadd.f32 %v292_v35, %v290_v34  ;;  %v294_v51 = vstv %s1062_s21  ;;  %s1108_s9 = sld [smem:[#allocation8 + $0x6]]  ;;  %s1112_s1 = sld [smem:[#allocation8 + $0x7]] }
  0x51   :  { %v263_v52 = vadd.f32 %v262_v40, %v261_v32  ;;  %v271_v53 = vadd.f32 %v270_v41, %v269_v33  ;;  %v301_v54 = vadd.f32 %v300_v39, %v298_v38  ;;  %v302_v55 = vstv %s1064_s22  ;;  %s1114_s3 = sld [smem:[#allocation8 + $0x8]]  ;;  %s1119_s10 = sld [smem:[#allocation8 + $0x9]] }
  0x52   :  { %v279_v56 = vadd.f32 %v278_v44, %v277_v42  ;;  %v287_v57 = vadd.f32 %v286_v45, %v285_v43  ;;  %v306_v58 = vmul.f32 %v305_v46, %v1018_v0  ;;  %v308_v59 = vmul.f32 %v1027_v2, %v307_v47  ;;  %s1121_s11 = sld [smem:[#allocation8 + $0xa]]  ;;  %s1125_s12 = sld [smem:[#allocation8 + $0xb]] }
  0x53   :  { %v295_v60 = vadd.f32 %v294_v51, %v293_v50  ;;  %v310_v61 = vstv %s1078_s24  ;;  %v313_v62 = vstv %s1070_s23  ;;  %v315_v63 = vstv %s1076_s4  ;;  %s1127_s13 = sld [smem:[#allocation8 + $0xc]]  ;;  %s1134_s14 = sld [smem:[#allocation8 + $0xd]] }
  0x54   :  { %v303_v1 = vadd.f32 %v302_v55, %v301_v54  ;;  %v309_v3 = vadd.f32 %v308_v59, %v306_v58  ;;  %v314_v4 = vmul.f32 %v313_v62, %v1018_v0  ;;  %v316_v5 = vmul.f32 %v1027_v2, %v315_v63  ;;  %s1136_s15 = sld [smem:[#allocation8 + $0xe]]  ;;  %s1142_s16 = sld [smem:[#allocation8 + $0xf]] }
  0x55   :  { %v1129_v6 = vmax.f32 %v247_v48, 0.0  ;;  %v1131_v7 = vmax.f32 %v255_v49, 0.0  ;;  %v318_v8 = vstv %s1082_s25  ;;  %v1138_v9 = vmax.f32 %v263_v52, 0.0  ;;  %s1144_s17 = sld [smem:[#allocation8 + $0x10]]  ;;  %s1150_s0 = sld [smem:[#allocation8 + $0x11]] }
  0x56   :  { %v1140_v0 = vmax.f32 %v271_v53, 0.0  ;;  %v311_v2 = vadd.f32 %v310_v61, %v309_v3  ;;  %v317_v10 = vadd.f32 %v316_v5, %v314_v4  ;;  %v1146_v11 = vmax.f32 %v279_v56, 0.0  ;;  %s1152_s2 = sld [smem:[#allocation8 + $0x12]]  ;;  %s1158_s6 = sld [smem:[#allocation8 + $0x13]] }
  0x57   :  { %1876 = vst [vmem:[#allocation17_spill] sm:$0xff] %v1129_v6  ;;  %1877 = vst [vmem:[#allocation18_spill] sm:$0xff] %v1131_v7  ;;  %v1148_v12 = vmax.f32 %v287_v57, 0.0  ;;  %v1154_v13 = vmax.f32 %v295_v60, 0.0  ;;  %v1156_v14 = vmax.f32 %v303_v1, 0.0  ;;  %s1160_s18 = sld [smem:[#allocation8 + $0x14]]  ;;  %v321_v16 = vstv %s1090_s26 }
  0x58   :  { %v319_v15 = vadd.f32 %v318_v8, %v317_v10  ;;  %v325_v17 = vstv %s1096_s27  ;;  %v328_v18 = vstv %s1098_s28  ;;  %v331_v19 = vstv %s1101_s29  ;;  %s1166_s19 = sld [smem:[#allocation8 + $0x15]]  ;;  %s1168_s20 = sld [smem:[#allocation8 + $0x16]] }
  0x59   :  { %1878 = vst [vmem:[#allocation19_spill] sm:$0xff] %v1148_v12  ;;  %1879 = vst [vmem:[#allocation20_spill] sm:$0xff] %v1154_v13  ;;  %v1170_v20 = vmax.f32 %v311_v2, 0.0  ;;  %v334_v21 = vstv %s1103_s30  ;;  %v337_v22 = vstv %s1106_s8  ;;  %v340_v23 = vstv %s1108_s9  ;;  %s1175_s21 = sld [smem:[#allocation8 + $0x17]]  ;;  %s1177_s22 = sld [smem:[#allocation8 + $0x18]] }
  0x5a   :  { %1880 = vst [vmem:[#allocation21_spill] sm:$0xff] %v1156_v14  ;;  %v1179_v24 = vmax.f32 %v319_v15, 0.0  ;;  %v343_v25 = vstv %s1112_s1  ;;  %v346_v26 = vstv %s1114_s3  ;;  %s1183_s23 = sld [smem:[#allocation8 + $0x19]]  ;;  %s1185_s4 = sld [smem:[#allocation8 + $0x1a]]  ;;  %v1188_v27 = vmul.f32 %v321_v16, %v1129_v6 }
  0x5b   :  { %1881 = vst [vmem:[#allocation22_spill] sm:$0xff] %v1170_v20  ;;  %v1191_v28 = vmul.f32 %v325_v17, %v1131_v7  ;;  %v1194_v29 = vmul.f32 %v328_v18, %v1138_v9  ;;  %v349_v30 = vstv %s1119_s10  ;;  %s1197_s24 = sld [smem:[#allocation8 + $0x1b]]  ;;  %s1199_s25 = sld [smem:[#allocation8 + $0x1c]]  ;;  %v1202_v31 = vmul.f32 %v331_v19, %v1140_v0 }
  0x5c   :  { %1882 = vst [vmem:[#allocation23_spill] sm:$0xff] %v1179_v24  ;;  %v1205_v32 = vmul.f32 %v334_v21, %v1146_v11  ;;  %v1208_v33 = vmul.f32 %v337_v22, %v1148_v12  ;;  %v1211_v34 = vmul.f32 %v340_v23, %v1154_v13  ;;  %s1213_s26 = sld [smem:[#allocation8 + $0x1d]]  ;;  %s1215_s27 = sld [smem:[#allocation8 + $0x1e]]  ;;  %v1218_v35 = vmul.f32 %v343_v25, %v1156_v14 }
  0x5d   :  { %v1221_v36 = vmul.f32 %v346_v26, %v1170_v20  ;;  %v355_v37 = vstv %s1121_s11  ;;  %v359_v38 = vstv %s1125_s12  ;;  %s1225_s28 = sld [smem:[#allocation8 + $0x1f]]  ;;  %s1227_s29 = sld [smem:[#allocation8 + $0x20]]  ;;  %v1230_v39 = vmul.f32 %v349_v30, %v1179_v24 }
  0x5e   :  { %1883 = vst [vmem:[#allocation24_spill] sm:$0xff] %v1218_v35  ;;  %v362_v40 = vstv %s1127_s13  ;;  %v365_v41 = vstv %s1134_s14  ;;  %v368_v42 = vstv %s1136_s15  ;;  %s1235_s30 = sld [smem:[#allocation8 + $0x21]]  ;;  %s1237_s8 = sld [smem:[#allocation8 + $0x22]]  ;;  %v371_v43 = vstv %s1142_s16 }
  0x5f   :  { %1884 = vst [vmem:[#allocation25_spill] sm:$0xff] %v1221_v36  ;;  %1885 = vst [vmem:[#allocation26_spill] sm:$0xff] %v1230_v39  ;;  %v374_v44 = vstv %s1144_s17  ;;  %v377_v45 = vstv %s1150_s0  ;;  %v380_v46 = vstv %s1152_s2  ;;  %s1243_s9 = sld [smem:[#allocation8 + $0x23]]  ;;  %s1245_s1 = sld [smem:[#allocation8 + $0x24]]  ;;  %v1248_v47 = vmul.f32 %v355_v37, %v1129_v6 }
  0x60   :  { %v1251_v48 = vmul.f32 %v359_v38, %v1131_v7  ;;  %v383_v49 = vstv %s1158_s6  ;;  %v390_v50 = vstv %s1160_s18  ;;  %s1255_s3 = sld [smem:[#allocation8 + $0x25]]  ;;  %s1257_s10 = sld [smem:[#allocation8 + $0x26]]  ;;  %v1260_v51 = vmul.f32 %v362_v40, %v1138_v9 }
  0x61   :  { %v1263_v52 = vmul.f32 %v365_v41, %v1140_v0  ;;  %v1266_v53 = vmul.f32 %v368_v42, %v1146_v11  ;;  %v394_v54 = vstv %s1166_s19  ;;  %s1269_s11 = sld [smem:[#allocation8 + $0x27]]  ;;  %s1271_s12 = sld [smem:[#allocation8 + $0x28]]  ;;  %v1274_v55 = vmul.f32 %v371_v43, %v1148_v12 }
  0x62   :  { %v1277_v56 = vmul.f32 %v374_v44, %v1154_v13  ;;  %v1280_v57 = vmul.f32 %v377_v45, %v1156_v14  ;;  %v1283_v58 = vmul.f32 %v380_v46, %v1170_v20  ;;  %s1285_s13 = sld [smem:[#allocation8 + $0x29]]  ;;  %s1287_s14 = sld [smem:[#allocation8 + $0x2a]]  ;;  %v1290_v59 = vmul.f32 %v383_v49, %v1179_v24 }
  0x63   :  { %v1293_v60 = vmul.f32 %v390_v50, %v1129_v6  ;;  %v397_v61 = vstv %s1168_s20  ;;  %v400_v62 = vstv %s1175_s21  ;;  %s1297_s15 = sld [smem:[#allocation8 + $0x2b]]  ;;  %s1299_s16 = sld [smem:[#allocation8 + $0x2c]]  ;;  %v1302_v63 = vmul.f32 %v394_v54, %v1131_v7 }
  0x64   :  { %1886 = vst [vmem:[#allocation27_spill] sm:$0xff] %v1280_v57  ;;  %1887 = vst [vmem:[#allocation28_spill] sm:$0xff] %v1283_v58  ;;  %v403_v1 = vstv %s1177_s22  ;;  %v406_v3 = vstv %s1183_s23  ;;  %v409_v4 = vstv %s1185_s4  ;;  %s1307_s17 = sld [smem:[#allocation8 + $0x2d]]  ;;  %s1309_s0 = sld [smem:[#allocation8 + $0x2e]]  ;;  %v412_v5 = vstv %s1197_s24 }
  0x65   :  { %1888 = vst [vmem:[#allocation29_spill] sm:$0xff] %v1290_v59  ;;  %v415_v8 = vstv %s1199_s25  ;;  %v418_v2 = vstv %s1213_s26  ;;  %v425_v10 = vstv %s1215_s27  ;;  %s1315_s2 = sld [smem:[#allocation8 + $0x2f]]  ;;  %s1317_s6 = sld [smem:[#allocation8 + $0x30]]  ;;  %v1320_v15 = vmul.f32 %v397_v61, %v1138_v9 }
  0x66   :  { %v1323_v16 = vmul.f32 %v400_v62, %v1140_v0  ;;  %v429_v17 = vstv %s1225_s28  ;;  %v432_v18 = vstv %s1227_s29  ;;  %s1327_s18 = sld [smem:[#allocation8 + $0x31]]  ;;  %s1329_s19 = sld [smem:[#allocation8 + $0x32]]  ;;  %v1332_v19 = vmul.f32 %v403_v1, %v1146_v11 }
  0x67   :  { %v1335_v21 = vmul.f32 %v406_v3, %v1148_v12  ;;  %v1338_v22 = vmul.f32 %v409_v4, %v1154_v13  ;;  %v435_v23 = vstv %s1235_s30  ;;  %s1341_s20 = sld [smem:[#allocation8 + $0x33]]  ;;  %s1343_s21 = sld [smem:[#allocation8 + $0x34]]  ;;  %v1346_v25 = vmul.f32 %v412_v5, %v1156_v14 }
  0x68   :  { %v1349_v26 = vmul.f32 %v415_v8, %v1170_v20  ;;  %v1352_v30 = vmul.f32 %v418_v2, %v1179_v24  ;;  %v1355_v37 = vmul.f32 %v425_v10, %v1129_v6  ;;  %s1357_s22 = sld [smem:[#allocation8 + $0x35]]  ;;  %s1359_s23 = sld [smem:[#allocation8 + $0x36]]  ;;  %v1362_v38 = vmul.f32 %v429_v17, %v1131_v7 }
  0x69   :  { %1889 = vst [vmem:[#allocation30_spill] sm:$0xff] %v1338_v22  ;;  %1890 = vst [vmem:[#allocation31_spill] sm:$0xff] %v1346_v25  ;;  %v1365_v40 = vmul.f32 %v432_v18, %v1138_v9  ;;  %v438_v41 = vstv %s1237_s8  ;;  %v441_v42 = vstv %s1243_s9  ;;  %s1369_s4 = sld [smem:[#allocation8 + $0x37]]  ;;  %s1371_s24 = sld [smem:[#allocation8 + $0x38]]  ;;  %v1374_v43 = vmul.f32 %v435_v23, %v1140_v0 }
  0x6a   :  { %1891 = vst [vmem:[#allocation32_spill] sm:$0xff] %v1349_v26  ;;  %1892 = vst [vmem:[#allocation33_spill] sm:$0xff] %v1352_v30  ;;  %v444_v44 = vstv %s1245_s1  ;;  %v447_v45 = vstv %s1255_s3  ;;  %v450_v46 = vstv %s1257_s10  ;;  %s1379_s25 = sld [smem:[#allocation8 + $0x39]]  ;;  %s1381_s26 = sld [smem:[#allocation8 + $0x3a]]  ;;  %v453_v49 = vstv %s1269_s11 }
  0x6b   :  { %v460_v50 = vstv %s1271_s12  ;;  %v464_v54 = vstv %s1285_s13  ;;  %v467_v61 = vstv %s1287_s14  ;;  %s1387_s27 = sld [smem:[#allocation8 + $0x3b]]  ;;  %s1389_s28 = sld [smem:[#allocation8 + $0x3c]]  ;;  %v1392_v62 = vmul.f32 %v438_v41, %v1146_v11 }
  0x6c   :  { %v1395_v1 = vmul.f32 %v441_v42, %v1148_v12  ;;  %v470_v3 = vstv %s1297_s15  ;;  %v473_v4 = vstv %s1299_s16  ;;  %s1399_s29 = sld [smem:[#allocation8 + $0x3d]]  ;;  %s1401_s30 = sld [smem:[#allocation8 + $0x3e]]  ;;  %v1404_v5 = vmul.f32 %v444_v44, %v1154_v13 }
  0x6d   :  { %v1407_v8 = vmul.f32 %v447_v45, %v1156_v14  ;;  %v1410_v2 = vmul.f32 %v450_v46, %v1170_v20  ;;  %v476_v10 = vstv %s1307_s17  ;;  %s1413_s8 = sld [smem:[#allocation8 + $0x3f]]  ;;  %s1415_s9 = sld [smem:[#allocation8 + $0x40]]  ;;  %v1418_v17 = vmul.f32 %v453_v49, %v1179_v24 }
  0x6e   :  { %1893 = vst [vmem:[#allocation34_spill] sm:$0xff] %v1404_v5  ;;  %v1421_v18 = vmul.f32 %v460_v50, %v1129_v6  ;;  %v1424_v23 = vmul.f32 %v464_v54, %v1131_v7  ;;  %v1427_v41 = vmul.f32 %v467_v61, %v1138_v9  ;;  %s1429_s1 = sld [smem:[#allocation8 + $0x41]]  ;;  %s1431_s3 = sld [smem:[#allocation8 + $0x42]]  ;;  %v1434_v42 = vmul.f32 %v470_v3, %v1140_v0 }
  0x6f   :  { %1894 = vst [vmem:[#allocation35_spill] sm:$0xff] %v1407_v8  ;;  %1895 = vst [vmem:[#allocation36_spill] sm:$0xff] %v1410_v2  ;;  %v1437_v44 = vmul.f32 %v473_v4, %v1146_v11  ;;  %v479_v45 = vstv %s1309_s0  ;;  %v482_v46 = vstv %s1315_s2  ;;  %s1441_s10 = sld [smem:[#allocation8 + $0x43]]  ;;  %s1443_s11 = sld [smem:[#allocation8 + $0x44]]  ;;  %v1446_v49 = vmul.f32 %v476_v10, %v1148_v12 }
  0x70   :  { %1896 = vst [vmem:[#allocation37_spill] sm:$0xff] %v1418_v17  ;;  %v485_v50 = vstv %s1317_s6  ;;  %v488_v54 = vstv %s1327_s18  ;;  %v495_v61 = vstv %s1329_s19  ;;  %s1451_s12 = sld [smem:[#allocation8 + $0x45]]  ;;  %s1453_s13 = sld [smem:[#allocation8 + $0x46]]  ;;  %v499_v3 = vstv %s1341_s20 }
  0x71   :  { %1897 = vst [vmem:[#allocation38_spill] sm:$0xff] %v1446_v49  ;;  %v502_v4 = vstv %s1343_s21  ;;  %v505_v17 = vstv %s1357_s22  ;;  %v508_v30 = vstv %s1359_s23  ;;  %s1459_s14 = sld [smem:[#allocation8 + $0x47]]  ;;  %s1461_s15 = sld [smem:[#allocation8 + $0x48]]  ;;  %v1464_v59 = vmul.f32 %v479_v45, %v1154_v13 }
  0x72   :  { %v1467_v10 = vmul.f32 %v482_v46, %v1156_v14  ;;  %v511_v39 = vstv %s1369_s4  ;;  %v514_v2 = vstv %s1371_s24  ;;  %s1471_s16 = sld [smem:[#allocation8 + $0x49]]  ;;  %s1473_s17 = sld [smem:[#allocation8 + $0x4a]]  ;;  %v1476_v26 = vmul.f32 %v485_v50, %v1170_v20 }
  0x73   :  { %1898 = vst [vmem:[#allocation39_spill] sm:$0xff] %v1464_v59  ;;  %v1479_v58 = vmul.f32 %v488_v54, %v1179_v24  ;;  %v1482_v45 = vmul.f32 %v495_v61, %v1129_v6  ;;  %v517_v59 = vstv %s1379_s25  ;;  %s1485_s0 = sld [smem:[#allocation8 + $0x4b]]  ;;  %s1487_s2 = sld [smem:[#allocation8 + $0x4c]]  ;;  %v1490_v46 = vmul.f32 %v499_v3, %v1131_v7 }
  0x74   :  { %1899 = vst [vmem:[#allocation40_spill] sm:$0xff] %v1467_v10  ;;  %1900 = vst [vmem:[#allocation41_spill] sm:$0xff] %v1476_v26  ;;  %v1493_v50 = vmul.f32 %v502_v4, %v1138_v9  ;;  %v1496_v54 = vmul.f32 %v505_v17, %v1140_v0  ;;  %v1499_v61 = vmul.f32 %v508_v30, %v1146_v11  ;;  %s1501_s6 = sld [smem:[#allocation8 + $0x4d]]  ;;  %s1503_s18 = sld [smem:[#allocation8 + $0x4e]]  ;;  %v523_v17 = vstv %s1387_s27 }
  0x75   :  { %1901 = vst [vmem:[#allocation42_spill] sm:$0xff] %v1479_v58  ;;  %v1506_v3 = vmul.f32 %v511_v39, %v1148_v12  ;;  %v1509_v4 = vmul.f32 %v514_v2, %v1154_v13  ;;  %v520_v58 = vstv %s1381_s26  ;;  %s1513_s19 = sld [smem:[#allocation8 + $0x4f]]  ;;  %s1515_s20 = sld [smem:[#allocation8 + $0x50]]  ;;  %v1518_v30 = vmul.f32 %v517_v59, %v1156_v14 }
  0x76   :  { %1902 = vst [vmem:[#allocation43_spill] sm:$0xff] %v1499_v61  ;;  %v530_v26 = vstv %s1389_s28  ;;  %v534_v10 = vstv %s1399_s29  ;;  %v537_v36 = vstv %s1401_s30  ;;  %s1523_s21 = sld [smem:[#allocation8 + $0x51]]  ;;  %v540_v39 = vstv %s1413_s8  ;;  %s1537_s22 = sld [smem:[#allocation8 + $0x52]] }
  0x77   :  { %1903 = vst [vmem:[#allocation44_spill] sm:$0xff] %v1506_v3  ;;  %1904 = vst [vmem:[#allocation45_spill] sm:$0xff] %v1509_v4  ;;  %v543_v2 = vstv %s1415_s9  ;;  %v546_v4 = vstv %s1429_s1  ;;  %v549_v3 = vstv %s1431_s3  ;;  %v1530_v8 = vmul.f32 %v520_v58, %v1170_v20  ;;  %s1539_s23 = sld [smem:[#allocation8 + $0x53]]  ;;  %s1551_s4 = sld [smem:[#allocation8 + $0x54]] }
  0x78   :  { %1905 = vst [vmem:[#allocation46_spill] sm:$0xff] %v1518_v30  ;;  %v1533_v25 = vmul.f32 %v523_v17, %v1179_v24  ;;  %v552_v49 = vstv %s1441_s10  ;;  %v555_v59 = vstv %s1443_s11  ;;  %v1542_v30 = vmul.f32 %v530_v26, %v1129_v6  ;;  %s1573_s24 = sld [smem:[#allocation9]]  ;;  %s1575_s25 = sld [smem:[#allocation9 + $0x1]] }
  0x79   :  { %1906 = vst [vmem:[#allocation47_spill] sm:$0xff] %v1530_v8  ;;  %v1545_v57 = vmul.f32 %v534_v10, %v1131_v7  ;;  %v1548_v58 = vmul.f32 %v537_v36, %v1138_v9  ;;  %v558_v17 = vstv %s1451_s12  ;;  %v1557_v8 = vmul.f32 %v543_v2, %v1146_v11  ;;  %s1583_s26 = sld [smem:[#allocation9 + $0x2]]  ;;  %s1585_s27 = sld [smem:[#allocation9 + $0x3]] }
  0x7a   :  { %1907 = vst [vmem:[#allocation48_spill] sm:$0xff] %v1533_v25  ;;  %v1554_v25 = vmul.f32 %v540_v39, %v1140_v0  ;;  %v1560_v26 = vmul.f32 %v546_v4, %v1148_v12  ;;  %v1563_v10 = vmul.f32 %v549_v3, %v1154_v13  ;;  %v1566_v36 = vmul.f32 %v552_v49, %v1156_v14  ;;  %s1591_s28 = sld [smem:[#allocation9 + $0x4]]  ;;  %s1593_s29 = sld [smem:[#allocation9 + $0x5]] }
  0x7b   :  { %1909 = vst [vmem:[#allocation50_spill] sm:$0xff] %v1557_v8  ;;  %v1569_v35 = vmul.f32 %v555_v59, %v1170_v20  ;;  %v565_v39 = vstv %s1453_s13  ;;  %v1578_v4 = vmul.f32 %v558_v17, %v1179_v24  ;;  %v572_v3 = vstv %s1461_s15  ;;  %s1603_s30 = sld [smem:[#allocation8 + $0x55]]  ;;  %s1615_s8 = sld [smem:[#allocation9 + $0x6]] }
  0x7c   :  { %1908 = vst [vmem:[#allocation49_spill] sm:$0xff] %v1554_v25  ;;  %1910 = vst [vmem:[#allocation51_spill] sm:$0xff] %v1560_v26  ;;  %v569_v25 = vstv %s1459_s14  ;;  %v575_v2 = vstv %s1471_s16  ;;  %v581_v49 = vstv %s1485_s0  ;;  %v584_v59 = vstv %s1487_s2  ;;  %s1617_s9 = sld [smem:[#allocation9 + $0x7]]  ;;  %s1631_s1 = sld [smem:[#allocation11]] }
  0x7d   :  { %1911 = vst [vmem:[#allocation52_spill] sm:$0xff] %v1563_v10  ;;  %1912 = vst [vmem:[#allocation53_spill] sm:$0xff] %v1566_v36  ;;  %v578_v10 = vstv %s1473_s17  ;;  %v590_v36 = vstv %s1503_s18  ;;  %v1596_v26 = vmul.f32 %v565_v39, %v1129_v6  ;;  %v1599_v17 = vmul.f32 %v569_v25, %v1131_v7  ;;  %s1641_s3 = sld [smem:[#allocation11 + $0x1]]  ;;  %s1653_s10 = sld [smem:[#allocation11 + $0x2]] }
  0x7e   :  { %1913 = vst [vmem:[#allocation54_spill] sm:$0xff] %v1569_v35  ;;  %1914 = vst [vmem:[#allocation55_spill] sm:$0xff] %v1578_v4  ;;  %v587_v35 = vstv %s1501_s6  ;;  %v593_v4 = vstv %s1513_s19  ;;  %v600_v8 = vstv %s1515_s20  ;;  %v1606_v61 = vmul.f32 %v572_v3, %v1138_v9  ;;  %s1717_s11 = sld [smem:[#allocation8 + $0x56]]  ;;  %s1719_s12 = sld [smem:[#allocation11 + $0x3]] }
  0x7f   :  { %v1609_v5 = vmul.f32 %v575_v2, %v1140_v0  ;;  %v1612_v39 = vmul.f32 %v578_v10, %v1146_v11  ;;  %v604_v22 = vstv %s1523_s21  ;;  %v1620_v25 = vmul.f32 %v581_v49, %v1148_v12  ;;  %s1725_s13 = sld [smem:[#allocation8 + $0x57]]  ;;  %s1727_s14 = sld [smem:[#allocation8 + $0x5a]] }
  0x80   :  { %v1623_v3 = vmul.f32 %v584_v59, %v1154_v13  ;;  %v1626_v2 = vmul.f32 %v587_v35, %v1156_v14  ;;  %v1629_v10 = vmul.f32 %v590_v36, %v1170_v20  ;;  %v1637_v49 = vmul.f32 %v600_v8, %v1129_v6  ;;  %s1733_s15 = sld [smem:[#allocation8 + $0x58]]  ;;  %s1745_s17 = sld [smem:[#allocation11 + $0x4]] }
  0x81   :  { %1915 = vst [vmem:[#allocation56_spill] sm:$0xff] %v1612_v39  ;;  %v1634_v39 = vmul.f32 %v593_v4, %v1179_v24  ;;  %v607_v12 = vstv %s1537_s22  ;;  %v610_v59 = vstv %s1539_s23  ;;  %v323_v13 = vstv %s1573_s24  ;;  %s1735_s16 = sld [smem:[#allocation9 + $0x8]]  ;;  %s1747_s0 = sld [smem:[#allocation11 + $0x5]] }
  0x82   :  { %1916 = vst [vmem:[#allocation57_spill] sm:$0xff] %v1629_v10  ;;  %1918 = vst [vmem:[#allocation59_spill] sm:$0xff] %v1637_v49  ;;  %v357_v35 = vstv %s1575_s25  ;;  %v1646_v14 = vmul.f32 %v604_v22, %v1131_v7  ;;  %v613_v36 = vstv %s1551_s4  ;;  %v324_v20 = vadd.f32 %v323_v13, %v1188_v27  ;;  %s1753_s2 = sld [smem:[#allocation9 + $0x9]]  ;;  %s1757_s6 = sld [smem:[#allocation8 + $0x5b]] }
  0x83   :  { %1917 = vst [vmem:[#allocation58_spill] sm:$0xff] %v1634_v39  ;;  %v358_v4 = vadd.f32 %v357_v35, %v1248_v47  ;;  %v392_v24 = vstv %s1583_s26  ;;  %v427_v39 = vstv %s1585_s27  ;;  %v462_v6 = vstv %s1591_s28  ;;  %s1759_s18 = sld [smem:[#allocation8 + $0x5c]]  ;;  %s1769_s19 = sld [smem:[#allocation8 + $0x5d]] }
  0x84   :  { %v393_v8 = vadd.f32 %v392_v24, %v1293_v60  ;;  %v428_v10 = vadd.f32 %v427_v39, %v1355_v37  ;;  %v497_v49 = vstv %s1593_s29  ;;  %v327_v22 = vadd.f32 %v1191_v28, %v324_v20  ;;  %s1771_s20 = sld [smem:[#allocation8 + $0x5e]]  ;;  %s1783_s22 = sld [smem:[#allocation8 + $0x5f]] }
  0x85   :  { %v361_v7 = vadd.f32 %v1251_v48, %v358_v4  ;;  %v463_v13 = vadd.f32 %v462_v6, %v1421_v18  ;;  %v1663_v27 = vmul.f32 %v607_v12, %v1138_v9  ;;  %v498_v60 = vadd.f32 %v497_v49, %v1482_v45  ;;  %s1778_s21 = sld [smem:[#allocation11 + $0x6]]  ;;  %s1790_s23 = sld [smem:[#allocation8 + $0x60]] }
  0x86   :  { %v396_v47 = vadd.f32 %v1302_v63, %v393_v8  ;;  %v431_v24 = vadd.f32 %v1362_v38, %v428_v10  ;;  %v1669_v37 = vmul.f32 %v610_v59, %v1140_v0  ;;  %v330_v20 = vadd.f32 %v1194_v29, %v327_v22  ;;  %v1919_v8 = vld [vmem:[#allocation30_spill] sm:$0xff]  ;;  %s1798_s4 = sld [smem:[#allocation8 + $0x59]]  ;;  %s1805_s25 = sld [smem:[#allocation11 + $0x7]] }
  0x87   :  { %v364_v28 = vadd.f32 %v1260_v51, %v361_v7  ;;  %v1674_v48 = vmul.f32 %v613_v36, %v1146_v11  ;;  %v616_v6 = vstv %s1603_s30  ;;  %v532_v18 = vstv %s1615_s8  ;;  %v1920_v22 = vld [vmem:[#allocation34_spill] sm:$0xff]  ;;  %s1803_s24 = sld [smem:[#allocation8 + $0x61]]  ;;  %s1812_s26 = sld [smem:[#allocation8 + $0x62]] }
  0x88   :  { %v399_v12 = vadd.f32 %v1320_v15, %v396_v47  ;;  %v434_v63 = vadd.f32 %v1365_v40, %v431_v24  ;;  %v567_v38 = vstv %s1617_s9  ;;  %v333_v45 = vadd.f32 %v1202_v31, %v330_v20  ;;  %v1922_v47 = vld [vmem:[#allocation24_spill] sm:$0xff]  ;;  %v1923_v24 = vld [vmem:[#allocation27_spill] sm:$0xff]  ;;  %v1925_v20 = vld [vmem:[#allocation49_spill] sm:$0xff]  ;;  %s1821_s27 = sld [smem:[#allocation8 + $0x63]]  ;;  %s833_s28 = sld [smem:[#allocation11 + $0x8]] }
  0x89   :  { %v353_v39 = vstv %s1631_s1  ;;  %v367_v10 = vadd.f32 %v1263_v52, %v364_v28  ;;  %v466_v29 = vadd.f32 %v1424_v23, %v463_v13  ;;  %v387_v49 = vstv %s1641_s3  ;;  %v1921_v13 = vld [vmem:[#allocation43_spill] sm:$0xff]  ;;  %s834_s29 = sld [smem:[#allocation11 + $0x9]]  ;;  %s937_s9 = smov [#allocation12]  }
  0x8a   :  { %v402_v7 = vadd.f32 %v1323_v16, %v399_v12  ;;  %v437_v51 = vadd.f32 %v1374_v43, %v434_v63  ;;  %v501_v59 = vadd.f32 %v1490_v46, %v498_v60  ;;  %v336_v15 = vadd.f32 %v1205_v32, %v333_v45  ;;  %v1924_v60 = vld [vmem:[#allocation38_spill] sm:$0xff]  ;;  %v1927_v28 = vld [vmem:[#allocation35_spill] sm:$0xff]  ;;  %v1928_v63 = vld [vmem:[#allocation44_spill] sm:$0xff]  ;;  %s679_s1 = sshll.u32 %s937_s9, 4  ;;  %s680_s1 = int_to_ptr.vmem [resolvable:$true] %s679_s1 }
  0x8b   :  { %v370_v40 = vadd.f32 %v1266_v53, %v367_v10  ;;  %v469_v35 = vadd.f32 %v1427_v41, %v466_v29  ;;  %v533_v31 = vadd.f32 %v532_v18, %v1542_v30  ;;  %v422_v52 = vstv %s1653_s10  ;;  %v1930_v10 = vld [vmem:[#allocation28_spill] sm:$0xff]  ;;  %s902_s3 = scalar_lea.vmem %s680_s1, 128  ;;  %p907_p12 = scmp.lt.s32.totalorder %s680_s1, %s680_s1 }
  0x8c   :  { %v405_v36 = vadd.f32 %v1332_v19, %v402_v7  ;;  %v440_v23 = vadd.f32 %v1392_v62, %v437_v51  ;;  %v504_v4 = vadd.f32 %v1493_v50, %v501_v59  ;;  %v339_v16 = vadd.f32 %v1208_v33, %v336_v15  ;;  %v1931_v7 = vld [vmem:[#allocation39_spill] sm:$0xff]  ;;  %v1932_v59 = vld [vmem:[#allocation50_spill] sm:$0xff]  ;;  %p903_p11 = scmp.ne.s32.totalorder %s680_s1, %s902_s3  ;;  %p908_p13 = scmp.lt.s32.totalorder %s902_s3, %s902_s3 }
  0x8d   :  { %v373_v43 = vadd.f32 %v1274_v55, %v370_v40  ;;  %v472_v46 = vadd.f32 %v1434_v42, %v469_v35  ;;  %v536_v32 = vadd.f32 %v1545_v57, %v533_v31  ;;  %v568_v19 = vadd.f32 %v567_v38, %v1596_v26  ;;  %v1929_v38 = vld [vmem:[#allocation25_spill] sm:$0xff]  ;;  %v1933_v40 = vld [vmem:[#allocation32_spill] sm:$0xff] }
  0x8e   :  { %v408_v53 = vadd.f32 %v1335_v21, %v405_v36  ;;  %v443_v41 = vadd.f32 %v1395_v1, %v440_v23  ;;  %v507_v30 = vadd.f32 %v1496_v54, %v504_v4  ;;  %v342_v62 = vadd.f32 %v1211_v34, %v339_v16  ;;  %v1934_v31 = vld [vmem:[#allocation36_spill] sm:$0xff]  ;;  %v1935_v36 = vld [vmem:[#allocation45_spill] sm:$0xff]  ;;  %v1936_v16 = vld [vmem:[#allocation26_spill] sm:$0xff]  ;;  %p909_p0 = por %p908_p13, %p907_p12 }
  0x8f   :  { %v376_v50 = vadd.f32 %v1277_v56, %v373_v43  ;;  %v475_v33 = vadd.f32 %v1437_v44, %v472_v46  ;;  %v539_v55 = vadd.f32 %v1548_v58, %v536_v32  ;;  %v571_v1 = vadd.f32 %v1599_v17, %v568_v19  ;;  %v1926_v44 = vld [vmem:[#allocation31_spill] sm:$0xff]  ;;  %v1937_v46 = vld [vmem:[#allocation29_spill] sm:$0xff] }
  0x90   :  { %v411_v42 = vadd.f32 %v1919_v8, %v408_v53  ;;  %v446_v57 = vadd.f32 %v1920_v22, %v443_v41  ;;  %v510_v21 = vadd.f32 %v1921_v13, %v507_v30  ;;  %v345_v54 = vadd.f32 %v1922_v47, %v342_v62  ;;  %v1938_v53 = vld [vmem:[#allocation40_spill] sm:$0xff]  ;;  %v1939_v30 = vld [vmem:[#allocation51_spill] sm:$0xff]  ;;  %v1940_v62 = vld [vmem:[#allocation33_spill] sm:$0xff]  ;;  %p910_p1 = pnand %p909_p0, %p903_p11 }
  0x91   :  { %v379_v26 = vadd.f32 %v1923_v24, %v376_v50  ;;  %v478_v34 = vadd.f32 %v1924_v60, %v475_v33  ;;  %v542_v56 = vadd.f32 %v1925_v20, %v539_v55  ;;  %v574_v17 = vadd.f32 %v1606_v61, %v571_v1  ;;  %v1941_v33 = vld [vmem:[#allocation37_spill] sm:$0xff]  ;;  %v1942_v8 = vld [vmem:[#allocation46_spill] sm:$0xff]  ;;  %v1945_v47 = vld [vmem:[#allocation52_spill] sm:$0xff] }
  0x92   :  { %v414_v58 = vadd.f32 %v1926_v44, %v411_v42  ;;  %v449_v12 = vadd.f32 %v1927_v28, %v446_v57  ;;  %v513_v18 = vadd.f32 %v1928_v63, %v510_v21  ;;  %v348_v45 = vadd.f32 %v1929_v38, %v345_v54  ;;  %v1943_v42 = vld [vmem:[#allocation56_spill] sm:$0xff]  ;;  %v1944_v21 = vld [vmem:[#allocation41_spill] sm:$0xff]  ;;  %v1946_v60 = vld [vmem:[#allocation47_spill] sm:$0xff] }
  0x93   :  { %v382_v29 = vadd.f32 %v1930_v10, %v379_v26  ;;  %v481_v51 = vadd.f32 %v1931_v7, %v478_v34  ;;  %v545_v15 = vadd.f32 %v1932_v59, %v542_v56  ;;  %v577_v4 = vadd.f32 %v1609_v5, %v574_v17  ;;  %v1950_v10 = vld [vmem:[#allocation54_spill] sm:$0xff] }
  0x94   :  { %v417_v35 = vadd.f32 %v1933_v40, %v414_v58  ;;  %v452_v61 = vadd.f32 %v1934_v31, %v449_v12  ;;  %v516_v23 = vadd.f32 %v1935_v36, %v513_v18  ;;  %v351_v43 = vadd.f32 %v1936_v16, %v348_v45  ;;  %v1947_v58 = vld [vmem:[#allocation42_spill] sm:$0xff]  ;;  %v1948_v12 = vld [vmem:[#allocation53_spill] sm:$0xff]  ;;  %v1951_v31 = vld [vmem:[#allocation59_spill] sm:$0xff] }
  0x95   :  { %v385_v32 = vadd.f32 %v1937_v46, %v382_v29  ;;  %v484_v41 = vadd.f32 %v1938_v53, %v481_v51  ;;  %v548_v19 = vadd.f32 %v1939_v30, %v545_v15  ;;  %v580_v22 = vadd.f32 %v1943_v42, %v577_v4  ;;  %v1952_v4 = vld [vmem:[#allocation19_spill] sm:$0xff]  ;;  %v1956_v42 = vld [vmem:[#allocation18_spill] sm:$0xff] }
  0x96   :  { %v420_v50 = vadd.f32 %v1940_v62, %v417_v35  ;;  %v455_v55 = vadd.f32 %v1941_v33, %v452_v61  ;;  %v519_v5 = vadd.f32 %v1942_v8, %v516_v23  ;;  %v352_v57 = vmax.f32 %v351_v43, 0.0  ;;  %v1953_v43 = vld [vmem:[#allocation17_spill] sm:$0xff] }
  0x97   :  { %v386_v13 = vmax.f32 %v385_v32, 0.0  ;;  %v487_v1 = vadd.f32 %v1944_v21, %v484_v41  ;;  %v551_v54 = vadd.f32 %v1945_v47, %v548_v19  ;;  %v583_v20 = vadd.f32 %v1620_v25, %v580_v22  ;;  %v1954_v32 = vld [vmem:[#allocation55_spill] sm:$0xff]  ;;  %v1955_v19 = vld [vmem:[#allocation57_spill] sm:$0xff] }
  0x98   :  { %v421_v24 = vmax.f32 %v420_v50, 0.0  ;;  %v456_v26 = vmax.f32 %v455_v55, 0.0  ;;  %v522_v34 = vadd.f32 %v1946_v60, %v519_v5  ;;  %v354_v56 = vmul.f32 %v353_v39, %v352_v57 }
  0x99   :  { %v388_v44 = vmul.f32 %v387_v49, %v386_v13  ;;  %v490_v28 = vadd.f32 %v1947_v58, %v487_v1  ;;  %v554_v63 = vadd.f32 %v1948_v12, %v551_v54  ;;  %v457_v17 = vstv %s1719_s12  ;;  %v1949_v49 = vld [vmem:[#allocation48_spill] sm:$0xff] }
  0x9a   :  { %v423_v18 = vmul.f32 %v422_v52, %v421_v24  ;;  %v586_v25 = vadd.f32 %v1623_v3, %v583_v20  ;;  %v619_v38 = vstv %s1717_s11  ;;  %v525_v45 = vadd.f32 %v1949_v49, %v522_v34  ;;  %v1958_v34 = vld [vmem:[#allocation58_spill] sm:$0xff] }
  0x9b   :  { %v389_v39 = vadd.f32 %v388_v44, %v354_v56  ;;  %v557_v29 = vadd.f32 %v1950_v10, %v554_v63  ;;  %v635_v7 = vstv %s1727_s14  ;;  %v602_v52 = vstv %s1735_s16  ;;  %v1960_v63 = vld [vmem:[#allocation22_spill] sm:$0xff] }
  0x9c   :  { %v589_v51 = vadd.f32 %v1626_v2, %v586_v25  ;;  %v622_v59 = vstv %s1725_s13  ;;  %v625_v3 = vstv %s1733_s15  ;;  %v458_v40 = vmul.f32 %v457_v17, %v456_v26 }
  0x9d   :  { %v424_v15 = vadd.f32 %v423_v18, %v389_v39  ;;  %v491_v35 = vmax.f32 %v490_v28, 0.0  ;;  %v603_v61 = vadd.f32 %v602_v52, %v1951_v31  ;;  %v492_v36 = vstv %s1745_s17 }
  0x9e   :  { %v527_v23 = vstv %s1747_s0  ;;  %v617_v16 = vmul.f32 %v616_v6, %v1952_v4  ;;  %v636_v2 = vmul.f32 %v635_v7, %v1953_v43  ;;  %v526_v46 = vmax.f32 %v525_v45, 0.0 }
  0x9f   :  { %v560_v53 = vadd.f32 %v1954_v32, %v557_v29  ;;  %v606_v41 = vadd.f32 %v1646_v14, %v603_v61  ;;  %v637_v30 = vstv %s1753_s2  ;;  %v592_v62 = vadd.f32 %v1955_v19, %v589_v51  ;;  %v1957_v14 = vld [vmem:[#allocation20_spill] sm:$0xff] }
  0xa0   :  { %v638_v6 = vadd.f32 %v637_v30, %v636_v2  ;;  %v639_v50 = vstv %s1757_s6  ;;  %v642_v33 = vstv %s1759_s18  ;;  %v459_v55 = vadd.f32 %v458_v40, %v424_v15 }
  0xa1   :  { %v493_v8 = vmul.f32 %v492_v36, %v491_v35  ;;  %v609_v5 = vadd.f32 %v1663_v27, %v606_v41  ;;  %v640_v22 = vmul.f32 %v639_v50, %v1956_v42  ;;  %v620_v57 = vmul.f32 %v619_v38, %v1957_v14 }
  0xa2   :  { %v643_v13 = vmul.f32 %v642_v33, %v1138_v9  ;;  %v645_v21 = vstv %s1769_s19  ;;  %v648_v1 = vstv %s1771_s20  ;;  %v562_v47 = vstv %s1778_s21 }
  0xa3   :  { %v612_v54 = vadd.f32 %v1669_v37, %v609_v5  ;;  %v641_v24 = vadd.f32 %v640_v22, %v638_v6  ;;  %v646_v26 = vmul.f32 %v645_v21, %v1140_v0  ;;  %v528_v27 = vmul.f32 %v527_v23, %v526_v46  ;;  %v1959_v37 = vld [vmem:[#allocation21_spill] sm:$0xff] }
  0xa4   :  { %v561_v60 = vmax.f32 %v560_v53, 0.0  ;;  %v595_v20 = vadd.f32 %v1958_v34, %v592_v62  ;;  %v651_v56 = vstv %s1783_s22  ;;  %v494_v9 = vadd.f32 %v493_v8, %v459_v55 }
  0xa5   :  { %v615_v44 = vadd.f32 %v1674_v48, %v612_v54  ;;  %v644_v58 = vadd.f32 %v643_v13, %v641_v24  ;;  %v649_v28 = vmul.f32 %v648_v1, %v1146_v11  ;;  %v623_v12 = vmul.f32 %v622_v59, %v1959_v37 }
  0xa6   :  { %v626_v0 = vmul.f32 %v625_v3, %v1960_v63  ;;  %v654_v18 = vstv %s1790_s23  ;;  %v628_v25 = vstv %s1798_s4  ;;  %v652_v39 = vmul.f32 %v651_v56, %v1952_v4  ;;  %v1961_v3 = vld [vmem:[#allocation23_spill] sm:$0xff] }
  0xa7   :  { %v618_v17 = vadd.f32 %v617_v16, %v615_v44  ;;  %v647_v38 = vadd.f32 %v646_v26, %v644_v58  ;;  %v563_v49 = vmul.f32 %v562_v47, %v561_v60  ;;  %v596_v45 = vmax.f32 %v595_v20, 0.0 }
  0xa8   :  { %v597_v10 = vstv %s1805_s25  ;;  %v657_v48 = vstv %s1803_s24  ;;  %v529_v29 = vadd.f32 %v528_v27, %v494_v9  ;;  %v655_v51 = vmul.f32 %v654_v18, %v1957_v14 }
  0xa9   :  { %v621_v7 = vadd.f32 %v620_v57, %v618_v17  ;;  %v650_v11 = vadd.f32 %v649_v28, %v647_v38  ;;  %v660_v52 = vstv %s1812_s26  ;;  %v629_v15 = vmul.f32 %v628_v25, %v1961_v3 }
  0xaa   :  { %v658_v35 = vmul.f32 %v657_v48, %v1959_v37  ;;  %v598_v31 = vmul.f32 %v597_v10, %v596_v45  ;;  %v663_v61 = vstv %s1821_s27  ;;  %v564_v36 = vadd.f32 %v563_v49, %v529_v29 }
  0xab   :  { %v624_v59 = vadd.f32 %v623_v12, %v621_v7  ;;  %v653_v40 = vadd.f32 %v652_v39, %v650_v11  ;;  %v661_v16 = vmul.f32 %v660_v52, %v1960_v63  ;;  %v664_v46 = vmul.f32 %v663_v61, %v1961_v3 }
  0xac   :  { %v632_v32 = vstv %s833_s28  ;;  %v599_v53 = vadd.f32 %v598_v31, %v564_v36  ;;  %v667_v6 = vstv %s834_s29  ;;  %v670_v8 = vstv %s1861_s5 }
  0xad   :  { %v627_v23 = vadd.f32 %v626_v0, %v624_v59  ;;  %v656_v4 = vadd.f32 %v655_v51, %v653_v40 }
  0xaf   :  { %v630_v43 = vadd.f32 %v629_v15, %v627_v23  ;;  %v659_v2 = vadd.f32 %v658_v35, %v656_v4 }
  0xb1   :  { %v631_v41 = vmax.f32 %v630_v43, 0.0  ;;  %v662_v30 = vadd.f32 %v661_v16, %v659_v2 }
  0xb3   :  { %v633_v19 = vmul.f32 %v632_v32, %v631_v41  ;;  %v665_v62 = vadd.f32 %v664_v46, %v662_v30 }
  0xb5   :  { %v634_v50 = vadd.f32 %v633_v19, %v599_v53  ;;  %v666_v33 = vmax.f32 %v665_v62, 0.0 }
  0xb7   :  { %v668_v55 = vmul.f32 %v667_v6, %v666_v33 }
  0xb9   :  { %v669_v5 = vadd.f32 %v668_v55, %v634_v50 }
  0xbb   :  { %v671_v42 = vadd.f32 %v670_v8, %v669_v5 }
  0xbd   :  { %672 = vst [vmem:[#allocation12] sm:$0xff] %v671_v42 }
  0xbe   :  { %913 = shalt.err (!%p910_p1)
}
  0xbf   :  { %s914_s12 = scalar_lea.hbm %s1863_s7, 128 }
  0xc0   :  { %p915_p2 = scmp.ne.s32.totalorder %s1863_s7, %s914_s12  ;;  %p918_p3 = scmp.lt.u32.totalorder %s914_s12, %s1863_s7 }
  0xc2   :  { %p920_p4 = pnand %p918_p3, %p915_p2 }
  0xc4   :  { %923 = shalt.err (!%p920_p4)
}
  0xc5   :  { %682 = dma.vmem_to_hbm [thread:$0]  %s680_s1, 128, %s1863_s7, [#allocation4]  }
  0xc6   :  { %930 = dma.done.wait [#allocation4], 128  }
  0xc7   :  { %931 = vsyncadd [#allocation4], 4294967168 }
  0xc8   :  { %686 = vsyncpa [#allocation4], 1 }
  0xc9   :  { %687 = vsyncpa [#allocation5], 1 }
  0xca   :  { %688 = vsyncpa [#allocation7], 1 }
  0xcb   :  { %689 = vsyncpa [#allocation10], 1 }

</bundles_post_ra>
